<compile_context>
chip_gen: v6e
topology: v6e:2x2x1
jax: 0.10.0
libtpu: 0.0.40
codegen_flags: <defaults>
</compile_context>

<pallas_src>
import jax
import jax.numpy as jnp
import numpy as np
from jax.experimental import pallas as pl
from jax.experimental.pallas import tpu as pltpu


# -----------------------------------------------------------------------------
# Pallas kernel: bidirectional LSTM + 2-layer MLP head, all in VMEM.
# -----------------------------------------------------------------------------
def binding_predictor_kernel(
    x_ref,       # (T, Bp, E)   bf16  time-major input, batch padded to 16
    w_proj_ref,  # (E, 8H)      bf16  fused input-projection weight (regrouped)
    b_proj_ref,  # (1, 8H)      f32   fused bias b_ih+b_hh (regrouped)
    w_rec_ref,   # (2H, 8H)     bf16  block-diag recurrent weight (regrouped)
    w1_ref,      # (2H, C)      bf16  classifier layer-1 weight^T
    b1_ref,      # (1, C)       f32
    w2_ref,      # (1, C)       bf16  classifier layer-2 weight (row vector)
    b2_ref,      # (1, 1)       f32
    out_ref,     # (1, T*Bp)    f32   lane-dense logits (time-major flattened)
    xp_ref,      # scratch (T, Bp, 8H) f32  fused input projection (+bias)
    h_ref,       # scratch (T, Bp, 2H) f32  [h_fwd | h_bwd] hidden states
):
    T, Bp, E = x_ref.shape
    H8 = w_proj_ref.shape[1]
    H = H8 // 8
    H2 = 2 * H

    # ---- Hoisted fused input projection: ONE MXU matmul for both directions,
    # ---- biases folded in once. Off the serial recurrent chain. -------------
    x2 = x_ref[...].reshape(T * Bp, E)
    xp_ref[...] = (
        jnp.dot(x2, w_proj_ref[...], preferred_element_type=jnp.float32)
        + b_proj_ref[...]
    ).reshape(T, Bp, H8)

    # Recurrent block-diagonal weight loaded once; lives in vregs across loop.
    w_rec = w_rec_ref[...]

    # Column mask: True on forward-direction stripes of the regrouped layout
    # [i_f i_b | f_f f_b | g_f g_b | o_f o_b]  (hoisted, constant).
    fwd_mask = (
        jax.lax.broadcasted_iota(jnp.int32, (Bp, H8), 1) % H2
    ) < H

    # ---- Interleaved fwd/bwd recurrence with a single combined carry and a
    # ---- single MXU push per step.  Gate order: i, f, g, o (PyTorch). -------
    def step(i, carry):
        h, c = carry                       # (Bp, 2H) f32, layout [fwd | bwd]
        t_b = T - 1 - i

        # Time-aligned fused projection: fwd stripes from time i, bwd stripes
        # from time T-1-i.  Carry-independent -> overlaps previous step's dot.
        xp_i = jnp.where(fwd_mask, xp_ref[i], xp_ref[t_b])

        gates = xp_i + jnp.dot(
            h.astype(jnp.bfloat16), w_rec, preferred_element_type=jnp.float32
        )                                   # (Bp, 8H) f32

        # EUP: sigmoid only on i/f/o groups, tanh only on g group.
        sig_if = jax.nn.sigmoid(gates[:, 0:2 * H2])
        i_g = sig_if[:, 0:H2]
        f_g = sig_if[:, H2:2 * H2]
        g_g = jnp.tanh(gates[:, 2 * H2:3 * H2])
        o_g = jax.nn.sigmoid(gates[:, 3 * H2:4 * H2])

        c = f_g * c + i_g * g_g             # (Bp, 2H) f32
        h = o_g * jnp.tanh(c)               # (Bp, 2H) f32

        # Store halves: fwd hidden at time i, bwd hidden at time T-1-i.
        # (Off the serial dependent chain - nothing in the loop reads h_ref.)
        h_ref[i, :, 0:H] = h[:, 0:H]
        h_ref[t_b, :, H:H2] = h[:, H:H2]
        return (h, c)

    z = jnp.zeros((Bp, H2), jnp.float32)
    jax.lax.fori_loop(0, T, step, (z, z), unroll=min(T, 8))

    # ---- Classifier: Linear(2H->C) + ReLU + (Dropout=identity) + Linear(C->1)
    # ---- Single (T*Bp, 2H) @ (2H, C) matmul (no per-direction split). -------
    h2 = h_ref[...].reshape(T * Bp, H2).astype(jnp.bfloat16)
    hid = jnp.maximum(
        jnp.dot(h2, w1_ref[...], preferred_element_type=jnp.float32)
        + b1_ref[...],
        0.0,
    )                                       # (T*Bp, C) f32

    # Final layer as a (1, C) x (T*Bp, C)^T contraction -> lane-dense
    # (1, T*Bp) row, written with a single unmasked store.
    logits_row = jax.lax.dot_general(
        w2_ref[...], hid.astype(jnp.bfloat16),
        dimension_numbers=(((1,), (1,)), ((), ())),
        preferred_element_type=jnp.float32,
    ) + b2_ref[...]
    out_ref[...] = logits_row


# -----------------------------------------------------------------------------
# Wrapper-side weight regrouping helpers (host / XLA, constant per params).
# -----------------------------------------------------------------------------
def _regroup(wf, wb, H):
    """Interleave forward/backward gate column blocks.

    wf, wb: (..., 4H) with PyTorch gate order [i, f, g, o] along the last dim.
    Returns (..., 8H) with columns [i_f i_b | f_f f_b | g_f g_b | o_f o_b].
    """
    lead = wf.shape[:-1]
    wf4 = wf.reshape(*lead, 4, H)
    wb4 = wb.reshape(*lead, 4, H)
    return jnp.stack([wf4, wb4], axis=-2).reshape(*lead, 8 * H)


def _blockdiag_regrouped(whh_f_t, whh_b_t, H):
    """Block-diagonal recurrent RHS (2H, 8H) in the regrouped column layout.

    Rows 0:H  (h_fwd) feed only forward stripes; rows H:2H (h_bwd) feed only
    backward stripes.  whh_*_t: (H, 4H) = weight_hh.T in PyTorch gate order.
    """
    z = jnp.zeros_like(whh_f_t)
    top = _regroup(whh_f_t, z, H)
    bot = _regroup(z, whh_b_t, H)
    return jnp.concatenate([top, bot], axis=0)


# -----------------------------------------------------------------------------
# Wrapper
# -----------------------------------------------------------------------------
@jax.jit
def binding_predictor_forward(x, params):
    """x: (B, T, emb_dim) float32 -> logits (B, T) float32."""
    B, T, E = x.shape
    H = params["w_hh_f"].shape[1]        # w_hh: (4H, H)
    C = params["b1"].shape[0]
    Bp = max(16, -(-B // 16) * 16)       # bf16 sublane tile = 16

    x_tm = jnp.transpose(x, (1, 0, 2)).astype(jnp.bfloat16)   # (T, B, E)
    if Bp != B:
        x_tm = jnp.pad(x_tm, ((0, 0), (0, Bp - B), (0, 0)))   # (T, Bp, E)

    bf16 = jnp.bfloat16
    w_proj = _regroup(params["w_ih_f"].T, params["w_ih_b"].T, H).astype(bf16)
    b_proj = _regroup((params["b_ih_f"] + params["b_hh_f"])[None, :],
                      (params["b_ih_b"] + params["b_hh_b"])[None, :], H)
    w_rec = _blockdiag_regrouped(params["w_hh_f"].T,
                                 params["w_hh_b"].T, H).astype(bf16)

    args = (
        x_tm,                                    # (T, Bp, E)  bf16
        w_proj,                                  # (E, 8H)     bf16
        b_proj.astype(jnp.float32),              # (1, 8H)     f32
        w_rec,                                   # (2H, 8H)    bf16
        params["w1"].T.astype(bf16),             # (2H, C)     bf16
        params["b1"][None, :].astype(jnp.float32),  # (1, C)
        params["w2"].astype(bf16),               # (1, C)      bf16
        params["b2"][None, :].astype(jnp.float32),  # (1, 1)
    )

    # Explicit VMEM budget (everything resident + headroom); keeps long-T
    # configs from silently tripping the default scoped-VMEM limit.
    est = (
        4 * T * Bp * (8 * H + 2 * H + 1)           # f32 scratches + output
        + 2 * T * Bp * E                           # bf16 input
        + 2 * (E + 2 * H) * 8 * H                  # bf16 projection/recurrent W
        + 2 * (2 * H + 1) * C                      # bf16 classifier W
        + 4 * (8 * H + C + 1)                      # f32 biases
    )
    vmem_limit = int(min(max(2 * est, 8 * 1024 * 1024), 127 * 1024 * 1024))

    vmem = pl.BlockSpec(memory_space=pltpu.MemorySpace.VMEM)
    out_row = pl.pallas_call(
        binding_predictor_kernel,
        out_shape=jax.ShapeDtypeStruct((1, T * Bp), jnp.float32),
        in_specs=[vmem] * len(args),
        out_specs=vmem,
        scratch_shapes=[
            pltpu.VMEM((T, Bp, 8 * H), jnp.float32),   # fused input projection
            pltpu.VMEM((T, Bp, 2 * H), jnp.float32),   # [h_fwd | h_bwd] states
        ],
        compiler_params=pltpu.CompilerParams(vmem_limit_bytes=vmem_limit),
    )(*args)

    # Un-flatten (row j = t*Bp + b), drop batch padding, back to (B, T).
    return out_row.reshape(T, Bp)[:, :B].T


# -----------------------------------------------------------------------------
# Deterministic parameter init (matches PyTorch module shapes)
# -----------------------------------------------------------------------------
def init_params(key, emb_dim, hidden_dim, classifier_hidden_dim):
    ks = jax.random.split(key, 12)
    H, E, C = hidden_dim, emb_dim, classifier_hidden_dim
    s_lstm = 1.0 / np.sqrt(H)
    s_l1 = 1.0 / np.sqrt(2 * H)
    s_l2 = 1.0 / np.sqrt(C)
    u = lambda k, shape, s: jax.random.uniform(k, shape, jnp.float32, -s, s)
    return {
        # LSTM forward direction
        "w_ih_f": u(ks[0], (4 * H, E), s_lstm),
        "w_hh_f": u(ks[1], (4 * H, H), s_lstm),
        "b_ih_f": u(ks[2], (4 * H,), s_lstm),
        "b_hh_f": u(ks[3], (4 * H,), s_lstm),
        # LSTM backward direction
        "w_ih_b": u(ks[4], (4 * H, E), s_lstm),
        "w_hh_b": u(ks[5], (4 * H, H), s_lstm),
        "b_ih_b": u(ks[6], (4 * H,), s_lstm),
        "b_hh_b": u(ks[7], (4 * H,), s_lstm),
        # classifier MLP
        "w1": u(ks[8], (C, 2 * H), s_l1),
        "b1": u(ks[9], (C,), s_l1),
        "w2": u(ks[10], (1, C), s_l2),
        "b2": u(ks[11], (1,), s_l2),
    }


# -----------------------------------------------------------------------------
# Pure-JAX f32 reference (mirrors torch.nn.LSTM + Sequential classifier)
# -----------------------------------------------------------------------------
def reference_forward(x, params):
    B, T, E = x.shape
    H = params["w_hh_f"].shape[1]

    def lstm_dir(wih, whh, b, reverse):
        def step(carry, x_t):
            h, c = carry
            gates = x_t @ wih.T + h @ whh.T + b
            i_g = jax.nn.sigmoid(gates[:, 0 * H:1 * H])
            f_g = jax.nn.sigmoid(gates[:, 1 * H:2 * H])
            g_g = jnp.tanh(gates[:, 2 * H:3 * H])
            o_g = jax.nn.sigmoid(gates[:, 3 * H:4 * H])
            c = f_g * c + i_g * g_g
            h = o_g * jnp.tanh(c)
            return (h, c), h

        xs = jnp.transpose(x, (1, 0, 2))
        if reverse:
            xs = xs[::-1]
        init = (jnp.zeros((B, H), jnp.float32), jnp.zeros((B, H), jnp.float32))
        _, hs = jax.lax.scan(step, init, xs)
        if reverse:
            hs = hs[::-1]
        return jnp.transpose(hs, (1, 0, 2))               # (B, T, H)

    hf = lstm_dir(params["w_ih_f"], params["w_hh_f"],
                  params["b_ih_f"] + params["b_hh_f"], reverse=False)
    hb = lstm_dir(params["w_ih_b"], params["w_hh_b"],
                  params["b_ih_b"] + params["b_hh_b"], reverse=True)
    h = jnp.concatenate([hf, hb], axis=-1)                # (B, T, 2H)
    hid = jnp.maximum(h @ params["w1"].T + params["b1"], 0.0)
    out = (hid @ params["w2"].T + params["b2"])[..., 0]   # (B, T)
    return out


if __name__ == "__main__":
    # Small shapes consistent with the module: batch=2, seq=8, emb=32, hidden=32
    B, T = 2, 8
    EMB_DIM, HIDDEN_DIM, CLS_HIDDEN = 32, 32, 32

    key = jax.random.PRNGKey(0)
    k_x, k_p = jax.random.split(key)
    x = jax.random.normal(k_x, (B, T, EMB_DIM), jnp.float32)
    params = init_params(k_p, EMB_DIM, HIDDEN_DIM, CLS_HIDDEN)

    out = jax.block_until_ready(binding_predictor_forward(x, params))

    ref = reference_forward(x, params)
    assert out.shape == (B, T), out.shape
    # bf16 MXU boundaries (f32 accumulation / elementwise) -> looser tolerance.
    np.testing.assert_allclose(np.asarray(out), np.asarray(ref),
                               rtol=5e-2, atol=5e-2)

    print("KERNEL_OK")
</pallas_src>

<mosaic_0001>
module attributes {stable_mosaic.version = 11 : i64} {
  func.func @binding_predictor_kernel(%arg0: memref<8x16x32xbf16, #tpu.memory_space<vmem>>, %arg1: memref<32x256xbf16, #tpu.memory_space<vmem>>, %arg2: memref<1x256xf32, #tpu.memory_space<vmem>>, %arg3: memref<64x256xbf16, #tpu.memory_space<vmem>>, %arg4: memref<64x32xbf16, #tpu.memory_space<vmem>>, %arg5: memref<1x32xf32, #tpu.memory_space<vmem>>, %arg6: memref<1x32xbf16, #tpu.memory_space<vmem>>, %arg7: memref<1x1xf32, #tpu.memory_space<vmem>>, %arg8: memref<1x128xf32, #tpu.memory_space<vmem>>, %arg9: memref<8x16x256xf32, #tpu.memory_space<vmem>>, %arg10: memref<8x16x64xf32, #tpu.memory_space<vmem>>) attributes {dimension_semantics = [], scalar_prefetch = 0 : i64, scratch_operands = 2 : i64, tpu.core_type = #tpu.core_type<tc>} {
    %c0 = arith.constant 0 : index
    %c0_0 = arith.constant 0 : index
    %c0_1 = arith.constant 0 : index
    %0 = vector.load %arg0[%c0, %c0_0, %c0_1] : memref<8x16x32xbf16, #tpu.memory_space<vmem>>, vector<8x16x32xbf16>
    %1 = vector.shape_cast %0 : vector<8x16x32xbf16> to vector<128x32xbf16>
    %c0_2 = arith.constant 0 : index
    %c0_3 = arith.constant 0 : index
    %2 = vector.load %arg1[%c0_2, %c0_3] : memref<32x256xbf16, #tpu.memory_space<vmem>>, vector<32x256xbf16>
    %cst = arith.constant dense<0.000000e+00> : vector<128x256xf32>
    %3 = tpu.matmul %1, %2, %cst {dimension_numbers = #tpu.dot_dimension_numbers<[1], [0], [0], [1], [0, 0, 1, 1], [], []>} : vector<128x32xbf16>, vector<32x256xbf16>, vector<128x256xf32> -> vector<128x256xf32>
    %c0_4 = arith.constant 0 : index
    %c0_5 = arith.constant 0 : index
    %4 = vector.load %arg2[%c0_4, %c0_5] : memref<1x256xf32, #tpu.memory_space<vmem>>, vector<1x256xf32>
    %5 = vector.broadcast %4 : vector<1x256xf32> to vector<128x256xf32>
    %6 = arith.addf %3, %5 : vector<128x256xf32>
    %7 = vector.shape_cast %6 : vector<128x256xf32> to vector<8x16x256xf32>
    %c0_6 = arith.constant 0 : index
    %c0_7 = arith.constant 0 : index
    %c0_8 = arith.constant 0 : index
    %8 = vector.load %arg9[%c0_6, %c0_7, %c0_8] : memref<8x16x256xf32, #tpu.memory_space<vmem>>, vector<8x16x256xf32>
    tpu.vector_store %arg9[%c0_6, %c0_7, %c0_8], %7 {strides = array<i32>} : memref<8x16x256xf32, #tpu.memory_space<vmem>>, vector<8x16x256xf32>,
    %c0_9 = arith.constant 0 : index
    %c0_10 = arith.constant 0 : index
    %9 = vector.load %arg3[%c0_9, %c0_10] : memref<64x256xbf16, #tpu.memory_space<vmem>>, vector<64x256xbf16>
    %10 = tpu.iota {dimensions = array<i32: 1>} : vector<16x256xi32>
    %c64_i32 = arith.constant 64 : i32
    %c0_i32 = arith.constant 0 : i32
    %11 = arith.cmpi eq, %c64_i32, %c0_i32 : i32
    %c1_i32 = arith.constant 1 : i32
    %12 = arith.select %11, %c1_i32, %c64_i32 : i32
    %13 = vector.broadcast %12 : i32 to vector<16x256xi32>
    %14 = arith.remsi %10, %13 : vector<16x256xi32>
    %c0_i32_11 = arith.constant 0 : i32
    %15 = vector.broadcast %c0_i32_11 : i32 to vector<16x256xi32>
    %16 = arith.cmpi ne, %14, %15 : vector<16x256xi32>
    %c0_i32_12 = arith.constant 0 : i32
    %17 = vector.broadcast %c0_i32_12 : i32 to vector<16x256xi32>
    %18 = arith.cmpi slt, %14, %17 : vector<16x256xi32>
    %c0_i32_13 = arith.constant 0 : i32
    %19 = arith.cmpi slt, %12, %c0_i32_13 : i32
    %20 = vector.broadcast %19 : i1 to vector<16x256xi1>
    %21 = vector.broadcast %20 : vector<16x256xi1> to vector<16x256xi1>
    %22 = arith.xori %18, %21 : vector<16x256xi1>
    %23 = arith.andi %22, %16 : vector<16x256xi1>
    %24 = vector.broadcast %12 : i32 to vector<16x256xi32>
    %25 = arith.addi %14, %24 : vector<16x256xi32>
    %26 = arith.select %23, %25, %14 : vector<16x256xi1>, vector<16x256xi32>
    %c32_i32 = arith.constant 32 : i32
    %27 = vector.broadcast %c32_i32 : i32 to vector<16x256xi32>
    %28 = arith.cmpi slt, %26, %27 : vector<16x256xi32>
    %cst_14 = arith.constant 0.000000e+00 : f32
    %29 = vector.broadcast %cst_14 : f32 to vector<16x64xf32>
    %c0_i32_15 = arith.constant 0 : i32
    %c7_i32 = arith.constant 7 : i32
    %30 = arith.subi %c7_i32, %c0_i32_15 : i32
    %31 = arith.index_cast %c0_i32_15 : i32 to index
    %c0_16 = arith.constant 0 : index
    %c0_17 = arith.constant 0 : index
    %32 = vector.load %arg9[%31, %c0_16, %c0_17] : memref<8x16x256xf32, #tpu.memory_space<vmem>>, vector<1x16x256xf32>
    %33 = vector.shape_cast %32 : vector<1x16x256xf32> to vector<16x256xf32>
    %34 = arith.index_cast %30 : i32 to index
    %c0_18 = arith.constant 0 : index
    %c0_19 = arith.constant 0 : index
    %35 = vector.load %arg9[%34, %c0_18, %c0_19] : memref<8x16x256xf32, #tpu.memory_space<vmem>>, vector<1x16x256xf32>
    %36 = vector.shape_cast %35 : vector<1x16x256xf32> to vector<16x256xf32>
    %37 = arith.select %28, %33, %36 : vector<16x256xi1>, vector<16x256xf32>
    %38 = arith.truncf %29 : vector<16x64xf32> to vector<16x64xbf16>
    %cst_20 = arith.constant dense<0.000000e+00> : vector<16x256xf32>
    %39 = tpu.matmul %38, %9, %cst_20 {dimension_numbers = #tpu.dot_dimension_numbers<[1], [0], [0], [1], [0, 0, 1, 1], [], []>} : vector<16x64xbf16>, vector<64x256xbf16>, vector<16x256xf32> -> vector<16x256xf32>
    %40 = arith.addf %37, %39 : vector<16x256xf32>
    %41 = vector.extract_strided_slice %40 {offsets = [0, 0], sizes = [16, 128], strides = [1, 1]} : vector<16x256xf32> to vector<16x128xf32>
    %42 = arith.negf %41 : vector<16x128xf32>
    %43 = math.exp %42 : vector<16x128xf32>
    %cst_21 = arith.constant 1.000000e+00 : f32
    %44 = vector.broadcast %cst_21 : f32 to vector<16x128xf32>
    %45 = arith.addf %44, %43 : vector<16x128xf32>
    %46 = arith.divf %44, %45 : vector<16x128xf32>
    %47 = vector.extract_strided_slice %46 {offsets = [0, 0], sizes = [16, 64], strides = [1, 1]} : vector<16x128xf32> to vector<16x64xf32>
    %48 = vector.extract_strided_slice %46 {offsets = [0, 64], sizes = [16, 64], strides = [1, 1]} : vector<16x128xf32> to vector<16x64xf32>
    %49 = vector.extract_strided_slice %40 {offsets = [0, 128], sizes = [16, 64], strides = [1, 1]} : vector<16x256xf32> to vector<16x64xf32>
    %50 = math.tanh %49 : vector<16x64xf32>
    %51 = vector.extract_strided_slice %40 {offsets = [0, 192], sizes = [16, 64], strides = [1, 1]} : vector<16x256xf32> to vector<16x64xf32>
    %52 = arith.negf %51 : vector<16x64xf32>
    %53 = math.exp %52 : vector<16x64xf32>
    %cst_22 = arith.constant 1.000000e+00 : f32
    %54 = vector.broadcast %cst_22 : f32 to vector<16x64xf32>
    %55 = arith.addf %54, %53 : vector<16x64xf32>
    %56 = arith.divf %54, %55 : vector<16x64xf32>
    %57 = arith.mulf %48, %29 : vector<16x64xf32>
    %58 = arith.mulf %47, %50 : vector<16x64xf32>
    %59 = arith.addf %57, %58 : vector<16x64xf32>
    %60 = math.tanh %59 : vector<16x64xf32>
    %61 = arith.mulf %56, %60 : vector<16x64xf32>
    %62 = vector.extract_strided_slice %61 {offsets = [0, 0], sizes = [16, 32], strides = [1, 1]} : vector<16x64xf32> to vector<16x32xf32>
    %63 = arith.index_cast %c0_i32_15 : i32 to index
    %c0_23 = arith.constant 0 : index
    %c0_24 = arith.constant 0 : index
    %64 = vector.load %arg10[%63, %c0_23, %c0_24] : memref<8x16x64xf32, #tpu.memory_space<vmem>>, vector<1x16x32xf32>
    %65 = vector.shape_cast %64 : vector<1x16x32xf32> to vector<16x32xf32>
    %66 = vector.shape_cast %62 : vector<16x32xf32> to vector<1x16x32xf32>
    tpu.vector_store %arg10[%63, %c0_23, %c0_24], %66 {strides = array<i32>} : memref<8x16x64xf32, #tpu.memory_space<vmem>>, vector<1x16x32xf32>,
    %67 = vector.extract_strided_slice %61 {offsets = [0, 32], sizes = [16, 32], strides = [1, 1]} : vector<16x64xf32> to vector<16x32xf32>
    %68 = arith.index_cast %30 : i32 to index
    %c0_25 = arith.constant 0 : index
    %c32 = arith.constant 32 : index
    %69 = vector.load %arg10[%68, %c0_25, %c32] : memref<8x16x64xf32, #tpu.memory_space<vmem>>, vector<1x16x32xf32>
    %70 = vector.shape_cast %69 : vector<1x16x32xf32> to vector<16x32xf32>
    %71 = vector.shape_cast %67 : vector<16x32xf32> to vector<1x16x32xf32>
    tpu.vector_store %arg10[%68, %c0_25, %c32], %71 {strides = array<i32>} : memref<8x16x64xf32, #tpu.memory_space<vmem>>, vector<1x16x32xf32>,
    %c1_i32_26 = arith.constant 1 : i32
    %c7_i32_27 = arith.constant 7 : i32
    %72 = arith.subi %c7_i32_27, %c1_i32_26 : i32
    %73 = arith.index_cast %c1_i32_26 : i32 to index
    %c0_28 = arith.constant 0 : index
    %c0_29 = arith.constant 0 : index
    %74 = vector.load %arg9[%73, %c0_28, %c0_29] : memref<8x16x256xf32, #tpu.memory_space<vmem>>, vector<1x16x256xf32>
    %75 = vector.shape_cast %74 : vector<1x16x256xf32> to vector<16x256xf32>
    %76 = arith.index_cast %72 : i32 to index
    %c0_30 = arith.constant 0 : index
    %c0_31 = arith.constant 0 : index
    %77 = vector.load %arg9[%76, %c0_30, %c0_31] : memref<8x16x256xf32, #tpu.memory_space<vmem>>, vector<1x16x256xf32>
    %78 = vector.shape_cast %77 : vector<1x16x256xf32> to vector<16x256xf32>
    %79 = arith.select %28, %75, %78 : vector<16x256xi1>, vector<16x256xf32>
    %80 = arith.truncf %61 : vector<16x64xf32> to vector<16x64xbf16>
    %cst_32 = arith.constant dense<0.000000e+00> : vector<16x256xf32>
    %81 = tpu.matmul %80, %9, %cst_32 {dimension_numbers = #tpu.dot_dimension_numbers<[1], [0], [0], [1], [0, 0, 1, 1], [], []>} : vector<16x64xbf16>, vector<64x256xbf16>, vector<16x256xf32> -> vector<16x256xf32>
    %82 = arith.addf %79, %81 : vector<16x256xf32>
    %83 = vector.extract_strided_slice %82 {offsets = [0, 0], sizes = [16, 128], strides = [1, 1]} : vector<16x256xf32> to vector<16x128xf32>
    %84 = arith.negf %83 : vector<16x128xf32>
    %85 = math.exp %84 : vector<16x128xf32>
    %cst_33 = arith.constant 1.000000e+00 : f32
    %86 = vector.broadcast %cst_33 : f32 to vector<16x128xf32>
    %87 = arith.addf %86, %85 : vector<16x128xf32>
    %88 = arith.divf %86, %87 : vector<16x128xf32>
    %89 = vector.extract_strided_slice %88 {offsets = [0, 0], sizes = [16, 64], strides = [1, 1]} : vector<16x128xf32> to vector<16x64xf32>
    %90 = vector.extract_strided_slice %88 {offsets = [0, 64], sizes = [16, 64], strides = [1, 1]} : vector<16x128xf32> to vector<16x64xf32>
    %91 = vector.extract_strided_slice %82 {offsets = [0, 128], sizes = [16, 64], strides = [1, 1]} : vector<16x256xf32> to vector<16x64xf32>
    %92 = math.tanh %91 : vector<16x64xf32>
    %93 = vector.extract_strided_slice %82 {offsets = [0, 192], sizes = [16, 64], strides = [1, 1]} : vector<16x256xf32> to vector<16x64xf32>
    %94 = arith.negf %93 : vector<16x64xf32>
    %95 = math.exp %94 : vector<16x64xf32>
    %cst_34 = arith.constant 1.000000e+00 : f32
    %96 = vector.broadcast %cst_34 : f32 to vector<16x64xf32>
    %97 = arith.addf %96, %95 : vector<16x64xf32>
    %98 = arith.divf %96, %97 : vector<16x64xf32>
    %99 = arith.mulf %90, %59 : vector<16x64xf32>
    %100 = arith.mulf %89, %92 : vector<16x64xf32>
    %101 = arith.addf %99, %100 : vector<16x64xf32>
    %102 = math.tanh %101 : vector<16x64xf32>
    %103 = arith.mulf %98, %102 : vector<16x64xf32>
    %104 = vector.extract_strided_slice %103 {offsets = [0, 0], sizes = [16, 32], strides = [1, 1]} : vector<16x64xf32> to vector<16x32xf32>
    %105 = arith.index_cast %c1_i32_26 : i32 to index
    %c0_35 = arith.constant 0 : index
    %c0_36 = arith.constant 0 : index
    %106 = vector.load %arg10[%105, %c0_35, %c0_36] : memref<8x16x64xf32, #tpu.memory_space<vmem>>, vector<1x16x32xf32>
    %107 = vector.shape_cast %106 : vector<1x16x32xf32> to vector<16x32xf32>
    %108 = vector.shape_cast %104 : vector<16x32xf32> to vector<1x16x32xf32>
    tpu.vector_store %arg10[%105, %c0_35, %c0_36], %108 {strides = array<i32>} : memref<8x16x64xf32, #tpu.memory_space<vmem>>, vector<1x16x32xf32>,
    %109 = vector.extract_strided_slice %103 {offsets = [0, 32], sizes = [16, 32], strides = [1, 1]} : vector<16x64xf32> to vector<16x32xf32>
    %110 = arith.index_cast %72 : i32 to index
    %c0_37 = arith.constant 0 : index
    %c32_38 = arith.constant 32 : index
    %111 = vector.load %arg10[%110, %c0_37, %c32_38] : memref<8x16x64xf32, #tpu.memory_space<vmem>>, vector<1x16x32xf32>
    %112 = vector.shape_cast %111 : vector<1x16x32xf32> to vector<16x32xf32>
    %113 = vector.shape_cast %109 : vector<16x32xf32> to vector<1x16x32xf32>
    tpu.vector_store %arg10[%110, %c0_37, %c32_38], %113 {strides = array<i32>} : memref<8x16x64xf32, #tpu.memory_space<vmem>>, vector<1x16x32xf32>,
    %c2_i32 = arith.constant 2 : i32
    %c7_i32_39 = arith.constant 7 : i32
    %114 = arith.subi %c7_i32_39, %c2_i32 : i32
    %115 = arith.index_cast %c2_i32 : i32 to index
    %c0_40 = arith.constant 0 : index
    %c0_41 = arith.constant 0 : index
    %116 = vector.load %arg9[%115, %c0_40, %c0_41] : memref<8x16x256xf32, #tpu.memory_space<vmem>>, vector<1x16x256xf32>
    %117 = vector.shape_cast %116 : vector<1x16x256xf32> to vector<16x256xf32>
    %118 = arith.index_cast %114 : i32 to index
    %c0_42 = arith.constant 0 : index
    %c0_43 = arith.constant 0 : index
    %119 = vector.load %arg9[%118, %c0_42, %c0_43] : memref<8x16x256xf32, #tpu.memory_space<vmem>>, vector<1x16x256xf32>
    %120 = vector.shape_cast %119 : vector<1x16x256xf32> to vector<16x256xf32>
    %121 = arith.select %28, %117, %120 : vector<16x256xi1>, vector<16x256xf32>
    %122 = arith.truncf %103 : vector<16x64xf32> to vector<16x64xbf16>
    %cst_44 = arith.constant dense<0.000000e+00> : vector<16x256xf32>
    %123 = tpu.matmul %122, %9, %cst_44 {dimension_numbers = #tpu.dot_dimension_numbers<[1], [0], [0], [1], [0, 0, 1, 1], [], []>} : vector<16x64xbf16>, vector<64x256xbf16>, vector<16x256xf32> -> vector<16x256xf32>
    %124 = arith.addf %121, %123 : vector<16x256xf32>
    %125 = vector.extract_strided_slice %124 {offsets = [0, 0], sizes = [16, 128], strides = [1, 1]} : vector<16x256xf32> to vector<16x128xf32>
    %126 = arith.negf %125 : vector<16x128xf32>
    %127 = math.exp %126 : vector<16x128xf32>
    %cst_45 = arith.constant 1.000000e+00 : f32
    %128 = vector.broadcast %cst_45 : f32 to vector<16x128xf32>
    %129 = arith.addf %128, %127 : vector<16x128xf32>
    %130 = arith.divf %128, %129 : vector<16x128xf32>
    %131 = vector.extract_strided_slice %130 {offsets = [0, 0], sizes = [16, 64], strides = [1, 1]} : vector<16x128xf32> to vector<16x64xf32>
    %132 = vector.extract_strided_slice %130 {offsets = [0, 64], sizes = [16, 64], strides = [1, 1]} : vector<16x128xf32> to vector<16x64xf32>
    %133 = vector.extract_strided_slice %124 {offsets = [0, 128], sizes = [16, 64], strides = [1, 1]} : vector<16x256xf32> to vector<16x64xf32>
    %134 = math.tanh %133 : vector<16x64xf32>
    %135 = vector.extract_strided_slice %124 {offsets = [0, 192], sizes = [16, 64], strides = [1, 1]} : vector<16x256xf32> to vector<16x64xf32>
    %136 = arith.negf %135 : vector<16x64xf32>
    %137 = math.exp %136 : vector<16x64xf32>
    %cst_46 = arith.constant 1.000000e+00 : f32
    %138 = vector.broadcast %cst_46 : f32 to vector<16x64xf32>
    %139 = arith.addf %138, %137 : vector<16x64xf32>
    %140 = arith.divf %138, %139 : vector<16x64xf32>
    %141 = arith.mulf %132, %101 : vector<16x64xf32>
    %142 = arith.mulf %131, %134 : vector<16x64xf32>
    %143 = arith.addf %141, %142 : vector<16x64xf32>
    %144 = math.tanh %143 : vector<16x64xf32>
    %145 = arith.mulf %140, %144 : vector<16x64xf32>
    %146 = vector.extract_strided_slice %145 {offsets = [0, 0], sizes = [16, 32], strides = [1, 1]} : vector<16x64xf32> to vector<16x32xf32>
    %147 = arith.index_cast %c2_i32 : i32 to index
    %c0_47 = arith.constant 0 : index
    %c0_48 = arith.constant 0 : index
    %148 = vector.load %arg10[%147, %c0_47, %c0_48] : memref<8x16x64xf32, #tpu.memory_space<vmem>>, vector<1x16x32xf32>
    %149 = vector.shape_cast %148 : vector<1x16x32xf32> to vector<16x32xf32>
    %150 = vector.shape_cast %146 : vector<16x32xf32> to vector<1x16x32xf32>
    tpu.vector_store %arg10[%147, %c0_47, %c0_48], %150 {strides = array<i32>} : memref<8x16x64xf32, #tpu.memory_space<vmem>>, vector<1x16x32xf32>,
    %151 = vector.extract_strided_slice %145 {offsets = [0, 32], sizes = [16, 32], strides = [1, 1]} : vector<16x64xf32> to vector<16x32xf32>
    %152 = arith.index_cast %114 : i32 to index
    %c0_49 = arith.constant 0 : index
    %c32_50 = arith.constant 32 : index
    %153 = vector.load %arg10[%152, %c0_49, %c32_50] : memref<8x16x64xf32, #tpu.memory_space<vmem>>, vector<1x16x32xf32>
    %154 = vector.shape_cast %153 : vector<1x16x32xf32> to vector<16x32xf32>
    %155 = vector.shape_cast %151 : vector<16x32xf32> to vector<1x16x32xf32>
    tpu.vector_store %arg10[%152, %c0_49, %c32_50], %155 {strides = array<i32>} : memref<8x16x64xf32, #tpu.memory_space<vmem>>, vector<1x16x32xf32>,
    %c3_i32 = arith.constant 3 : i32
    %c7_i32_51 = arith.constant 7 : i32
    %156 = arith.subi %c7_i32_51, %c3_i32 : i32
    %157 = arith.index_cast %c3_i32 : i32 to index
    %c0_52 = arith.constant 0 : index
    %c0_53 = arith.constant 0 : index
    %158 = vector.load %arg9[%157, %c0_52, %c0_53] : memref<8x16x256xf32, #tpu.memory_space<vmem>>, vector<1x16x256xf32>
    %159 = vector.shape_cast %158 : vector<1x16x256xf32> to vector<16x256xf32>
    %160 = arith.index_cast %156 : i32 to index
    %c0_54 = arith.constant 0 : index
    %c0_55 = arith.constant 0 : index
    %161 = vector.load %arg9[%160, %c0_54, %c0_55] : memref<8x16x256xf32, #tpu.memory_space<vmem>>, vector<1x16x256xf32>
    %162 = vector.shape_cast %161 : vector<1x16x256xf32> to vector<16x256xf32>
    %163 = arith.select %28, %159, %162 : vector<16x256xi1>, vector<16x256xf32>
    %164 = arith.truncf %145 : vector<16x64xf32> to vector<16x64xbf16>
    %cst_56 = arith.constant dense<0.000000e+00> : vector<16x256xf32>
    %165 = tpu.matmul %164, %9, %cst_56 {dimension_numbers = #tpu.dot_dimension_numbers<[1], [0], [0], [1], [0, 0, 1, 1], [], []>} : vector<16x64xbf16>, vector<64x256xbf16>, vector<16x256xf32> -> vector<16x256xf32>
    %166 = arith.addf %163, %165 : vector<16x256xf32>
    %167 = vector.extract_strided_slice %166 {offsets = [0, 0], sizes = [16, 128], strides = [1, 1]} : vector<16x256xf32> to vector<16x128xf32>
    %168 = arith.negf %167 : vector<16x128xf32>
    %169 = math.exp %168 : vector<16x128xf32>
    %cst_57 = arith.constant 1.000000e+00 : f32
    %170 = vector.broadcast %cst_57 : f32 to vector<16x128xf32>
    %171 = arith.addf %170, %169 : vector<16x128xf32>
    %172 = arith.divf %170, %171 : vector<16x128xf32>
    %173 = vector.extract_strided_slice %172 {offsets = [0, 0], sizes = [16, 64], strides = [1, 1]} : vector<16x128xf32> to vector<16x64xf32>
    %174 = vector.extract_strided_slice %172 {offsets = [0, 64], sizes = [16, 64], strides = [1, 1]} : vector<16x128xf32> to vector<16x64xf32>
    %175 = vector.extract_strided_slice %166 {offsets = [0, 128], sizes = [16, 64], strides = [1, 1]} : vector<16x256xf32> to vector<16x64xf32>
    %176 = math.tanh %175 : vector<16x64xf32>
    %177 = vector.extract_strided_slice %166 {offsets = [0, 192], sizes = [16, 64], strides = [1, 1]} : vector<16x256xf32> to vector<16x64xf32>
    %178 = arith.negf %177 : vector<16x64xf32>
    %179 = math.exp %178 : vector<16x64xf32>
    %cst_58 = arith.constant 1.000000e+00 : f32
    %180 = vector.broadcast %cst_58 : f32 to vector<16x64xf32>
    %181 = arith.addf %180, %179 : vector<16x64xf32>
    %182 = arith.divf %180, %181 : vector<16x64xf32>
    %183 = arith.mulf %174, %143 : vector<16x64xf32>
    %184 = arith.mulf %173, %176 : vector<16x64xf32>
    %185 = arith.addf %183, %184 : vector<16x64xf32>
    %186 = math.tanh %185 : vector<16x64xf32>
    %187 = arith.mulf %182, %186 : vector<16x64xf32>
    %188 = vector.extract_strided_slice %187 {offsets = [0, 0], sizes = [16, 32], strides = [1, 1]} : vector<16x64xf32> to vector<16x32xf32>
    %189 = arith.index_cast %c3_i32 : i32 to index
    %c0_59 = arith.constant 0 : index
    %c0_60 = arith.constant 0 : index
    %190 = vector.load %arg10[%189, %c0_59, %c0_60] : memref<8x16x64xf32, #tpu.memory_space<vmem>>, vector<1x16x32xf32>
    %191 = vector.shape_cast %190 : vector<1x16x32xf32> to vector<16x32xf32>
    %192 = vector.shape_cast %188 : vector<16x32xf32> to vector<1x16x32xf32>
    tpu.vector_store %arg10[%189, %c0_59, %c0_60], %192 {strides = array<i32>} : memref<8x16x64xf32, #tpu.memory_space<vmem>>, vector<1x16x32xf32>,
    %193 = vector.extract_strided_slice %187 {offsets = [0, 32], sizes = [16, 32], strides = [1, 1]} : vector<16x64xf32> to vector<16x32xf32>
    %194 = arith.index_cast %156 : i32 to index
    %c0_61 = arith.constant 0 : index
    %c32_62 = arith.constant 32 : index
    %195 = vector.load %arg10[%194, %c0_61, %c32_62] : memref<8x16x64xf32, #tpu.memory_space<vmem>>, vector<1x16x32xf32>
    %196 = vector.shape_cast %195 : vector<1x16x32xf32> to vector<16x32xf32>
    %197 = vector.shape_cast %193 : vector<16x32xf32> to vector<1x16x32xf32>
    tpu.vector_store %arg10[%194, %c0_61, %c32_62], %197 {strides = array<i32>} : memref<8x16x64xf32, #tpu.memory_space<vmem>>, vector<1x16x32xf32>,
    %c4_i32 = arith.constant 4 : i32
    %c7_i32_63 = arith.constant 7 : i32
    %198 = arith.subi %c7_i32_63, %c4_i32 : i32
    %199 = arith.index_cast %c4_i32 : i32 to index
    %c0_64 = arith.constant 0 : index
    %c0_65 = arith.constant 0 : index
    %200 = vector.load %arg9[%199, %c0_64, %c0_65] : memref<8x16x256xf32, #tpu.memory_space<vmem>>, vector<1x16x256xf32>
    %201 = vector.shape_cast %200 : vector<1x16x256xf32> to vector<16x256xf32>
    %202 = arith.index_cast %198 : i32 to index
    %c0_66 = arith.constant 0 : index
    %c0_67 = arith.constant 0 : index
    %203 = vector.load %arg9[%202, %c0_66, %c0_67] : memref<8x16x256xf32, #tpu.memory_space<vmem>>, vector<1x16x256xf32>
    %204 = vector.shape_cast %203 : vector<1x16x256xf32> to vector<16x256xf32>
    %205 = arith.select %28, %201, %204 : vector<16x256xi1>, vector<16x256xf32>
    %206 = arith.truncf %187 : vector<16x64xf32> to vector<16x64xbf16>
    %cst_68 = arith.constant dense<0.000000e+00> : vector<16x256xf32>
    %207 = tpu.matmul %206, %9, %cst_68 {dimension_numbers = #tpu.dot_dimension_numbers<[1], [0], [0], [1], [0, 0, 1, 1], [], []>} : vector<16x64xbf16>, vector<64x256xbf16>, vector<16x256xf32> -> vector<16x256xf32>
    %208 = arith.addf %205, %207 : vector<16x256xf32>
    %209 = vector.extract_strided_slice %208 {offsets = [0, 0], sizes = [16, 128], strides = [1, 1]} : vector<16x256xf32> to vector<16x128xf32>
    %210 = arith.negf %209 : vector<16x128xf32>
    %211 = math.exp %210 : vector<16x128xf32>
    %cst_69 = arith.constant 1.000000e+00 : f32
    %212 = vector.broadcast %cst_69 : f32 to vector<16x128xf32>
    %213 = arith.addf %212, %211 : vector<16x128xf32>
    %214 = arith.divf %212, %213 : vector<16x128xf32>
    %215 = vector.extract_strided_slice %214 {offsets = [0, 0], sizes = [16, 64], strides = [1, 1]} : vector<16x128xf32> to vector<16x64xf32>
    %216 = vector.extract_strided_slice %214 {offsets = [0, 64], sizes = [16, 64], strides = [1, 1]} : vector<16x128xf32> to vector<16x64xf32>
    %217 = vector.extract_strided_slice %208 {offsets = [0, 128], sizes = [16, 64], strides = [1, 1]} : vector<16x256xf32> to vector<16x64xf32>
    %218 = math.tanh %217 : vector<16x64xf32>
    %219 = vector.extract_strided_slice %208 {offsets = [0, 192], sizes = [16, 64], strides = [1, 1]} : vector<16x256xf32> to vector<16x64xf32>
    %220 = arith.negf %219 : vector<16x64xf32>
    %221 = math.exp %220 : vector<16x64xf32>
    %cst_70 = arith.constant 1.000000e+00 : f32
    %222 = vector.broadcast %cst_70 : f32 to vector<16x64xf32>
    %223 = arith.addf %222, %221 : vector<16x64xf32>
    %224 = arith.divf %222, %223 : vector<16x64xf32>
    %225 = arith.mulf %216, %185 : vector<16x64xf32>
    %226 = arith.mulf %215, %218 : vector<16x64xf32>
    %227 = arith.addf %225, %226 : vector<16x64xf32>
    %228 = math.tanh %227 : vector<16x64xf32>
    %229 = arith.mulf %224, %228 : vector<16x64xf32>
    %230 = vector.extract_strided_slice %229 {offsets = [0, 0], sizes = [16, 32], strides = [1, 1]} : vector<16x64xf32> to vector<16x32xf32>
    %231 = arith.index_cast %c4_i32 : i32 to index
    %c0_71 = arith.constant 0 : index
    %c0_72 = arith.constant 0 : index
    %232 = vector.load %arg10[%231, %c0_71, %c0_72] : memref<8x16x64xf32, #tpu.memory_space<vmem>>, vector<1x16x32xf32>
    %233 = vector.shape_cast %232 : vector<1x16x32xf32> to vector<16x32xf32>
    %234 = vector.shape_cast %230 : vector<16x32xf32> to vector<1x16x32xf32>
    tpu.vector_store %arg10[%231, %c0_71, %c0_72], %234 {strides = array<i32>} : memref<8x16x64xf32, #tpu.memory_space<vmem>>, vector<1x16x32xf32>,
    %235 = vector.extract_strided_slice %229 {offsets = [0, 32], sizes = [16, 32], strides = [1, 1]} : vector<16x64xf32> to vector<16x32xf32>
    %236 = arith.index_cast %198 : i32 to index
    %c0_73 = arith.constant 0 : index
    %c32_74 = arith.constant 32 : index
    %237 = vector.load %arg10[%236, %c0_73, %c32_74] : memref<8x16x64xf32, #tpu.memory_space<vmem>>, vector<1x16x32xf32>
    %238 = vector.shape_cast %237 : vector<1x16x32xf32> to vector<16x32xf32>
    %239 = vector.shape_cast %235 : vector<16x32xf32> to vector<1x16x32xf32>
    tpu.vector_store %arg10[%236, %c0_73, %c32_74], %239 {strides = array<i32>} : memref<8x16x64xf32, #tpu.memory_space<vmem>>, vector<1x16x32xf32>,
    %c5_i32 = arith.constant 5 : i32
    %c7_i32_75 = arith.constant 7 : i32
    %240 = arith.subi %c7_i32_75, %c5_i32 : i32
    %241 = arith.index_cast %c5_i32 : i32 to index
    %c0_76 = arith.constant 0 : index
    %c0_77 = arith.constant 0 : index
    %242 = vector.load %arg9[%241, %c0_76, %c0_77] : memref<8x16x256xf32, #tpu.memory_space<vmem>>, vector<1x16x256xf32>
    %243 = vector.shape_cast %242 : vector<1x16x256xf32> to vector<16x256xf32>
    %244 = arith.index_cast %240 : i32 to index
    %c0_78 = arith.constant 0 : index
    %c0_79 = arith.constant 0 : index
    %245 = vector.load %arg9[%244, %c0_78, %c0_79] : memref<8x16x256xf32, #tpu.memory_space<vmem>>, vector<1x16x256xf32>
    %246 = vector.shape_cast %245 : vector<1x16x256xf32> to vector<16x256xf32>
    %247 = arith.select %28, %243, %246 : vector<16x256xi1>, vector<16x256xf32>
    %248 = arith.truncf %229 : vector<16x64xf32> to vector<16x64xbf16>
    %cst_80 = arith.constant dense<0.000000e+00> : vector<16x256xf32>
    %249 = tpu.matmul %248, %9, %cst_80 {dimension_numbers = #tpu.dot_dimension_numbers<[1], [0], [0], [1], [0, 0, 1, 1], [], []>} : vector<16x64xbf16>, vector<64x256xbf16>, vector<16x256xf32> -> vector<16x256xf32>
    %250 = arith.addf %247, %249 : vector<16x256xf32>
    %251 = vector.extract_strided_slice %250 {offsets = [0, 0], sizes = [16, 128], strides = [1, 1]} : vector<16x256xf32> to vector<16x128xf32>
    %252 = arith.negf %251 : vector<16x128xf32>
    %253 = math.exp %252 : vector<16x128xf32>
    %cst_81 = arith.constant 1.000000e+00 : f32
    %254 = vector.broadcast %cst_81 : f32 to vector<16x128xf32>
    %255 = arith.addf %254, %253 : vector<16x128xf32>
    %256 = arith.divf %254, %255 : vector<16x128xf32>
    %257 = vector.extract_strided_slice %256 {offsets = [0, 0], sizes = [16, 64], strides = [1, 1]} : vector<16x128xf32> to vector<16x64xf32>
    %258 = vector.extract_strided_slice %256 {offsets = [0, 64], sizes = [16, 64], strides = [1, 1]} : vector<16x128xf32> to vector<16x64xf32>
    %259 = vector.extract_strided_slice %250 {offsets = [0, 128], sizes = [16, 64], strides = [1, 1]} : vector<16x256xf32> to vector<16x64xf32>
    %260 = math.tanh %259 : vector<16x64xf32>
    %261 = vector.extract_strided_slice %250 {offsets = [0, 192], sizes = [16, 64], strides = [1, 1]} : vector<16x256xf32> to vector<16x64xf32>
    %262 = arith.negf %261 : vector<16x64xf32>
    %263 = math.exp %262 : vector<16x64xf32>
    %cst_82 = arith.constant 1.000000e+00 : f32
    %264 = vector.broadcast %cst_82 : f32 to vector<16x64xf32>
    %265 = arith.addf %264, %263 : vector<16x64xf32>
    %266 = arith.divf %264, %265 : vector<16x64xf32>
    %267 = arith.mulf %258, %227 : vector<16x64xf32>
    %268 = arith.mulf %257, %260 : vector<16x64xf32>
    %269 = arith.addf %267, %268 : vector<16x64xf32>
    %270 = math.tanh %269 : vector<16x64xf32>
    %271 = arith.mulf %266, %270 : vector<16x64xf32>
    %272 = vector.extract_strided_slice %271 {offsets = [0, 0], sizes = [16, 32], strides = [1, 1]} : vector<16x64xf32> to vector<16x32xf32>
    %273 = arith.index_cast %c5_i32 : i32 to index
    %c0_83 = arith.constant 0 : index
    %c0_84 = arith.constant 0 : index
    %274 = vector.load %arg10[%273, %c0_83, %c0_84] : memref<8x16x64xf32, #tpu.memory_space<vmem>>, vector<1x16x32xf32>
    %275 = vector.shape_cast %274 : vector<1x16x32xf32> to vector<16x32xf32>
    %276 = vector.shape_cast %272 : vector<16x32xf32> to vector<1x16x32xf32>
    tpu.vector_store %arg10[%273, %c0_83, %c0_84], %276 {strides = array<i32>} : memref<8x16x64xf32, #tpu.memory_space<vmem>>, vector<1x16x32xf32>,
    %277 = vector.extract_strided_slice %271 {offsets = [0, 32], sizes = [16, 32], strides = [1, 1]} : vector<16x64xf32> to vector<16x32xf32>
    %278 = arith.index_cast %240 : i32 to index
    %c0_85 = arith.constant 0 : index
    %c32_86 = arith.constant 32 : index
    %279 = vector.load %arg10[%278, %c0_85, %c32_86] : memref<8x16x64xf32, #tpu.memory_space<vmem>>, vector<1x16x32xf32>
    %280 = vector.shape_cast %279 : vector<1x16x32xf32> to vector<16x32xf32>
    %281 = vector.shape_cast %277 : vector<16x32xf32> to vector<1x16x32xf32>
    tpu.vector_store %arg10[%278, %c0_85, %c32_86], %281 {strides = array<i32>} : memref<8x16x64xf32, #tpu.memory_space<vmem>>, vector<1x16x32xf32>,
    %c6_i32 = arith.constant 6 : i32
    %c7_i32_87 = arith.constant 7 : i32
    %282 = arith.subi %c7_i32_87, %c6_i32 : i32
    %283 = arith.index_cast %c6_i32 : i32 to index
    %c0_88 = arith.constant 0 : index
    %c0_89 = arith.constant 0 : index
    %284 = vector.load %arg9[%283, %c0_88, %c0_89] : memref<8x16x256xf32, #tpu.memory_space<vmem>>, vector<1x16x256xf32>
    %285 = vector.shape_cast %284 : vector<1x16x256xf32> to vector<16x256xf32>
    %286 = arith.index_cast %282 : i32 to index
    %c0_90 = arith.constant 0 : index
    %c0_91 = arith.constant 0 : index
    %287 = vector.load %arg9[%286, %c0_90, %c0_91] : memref<8x16x256xf32, #tpu.memory_space<vmem>>, vector<1x16x256xf32>
    %288 = vector.shape_cast %287 : vector<1x16x256xf32> to vector<16x256xf32>
    %289 = arith.select %28, %285, %288 : vector<16x256xi1>, vector<16x256xf32>
    %290 = arith.truncf %271 : vector<16x64xf32> to vector<16x64xbf16>
    %cst_92 = arith.constant dense<0.000000e+00> : vector<16x256xf32>
    %291 = tpu.matmul %290, %9, %cst_92 {dimension_numbers = #tpu.dot_dimension_numbers<[1], [0], [0], [1], [0, 0, 1, 1], [], []>} : vector<16x64xbf16>, vector<64x256xbf16>, vector<16x256xf32> -> vector<16x256xf32>
    %292 = arith.addf %289, %291 : vector<16x256xf32>
    %293 = vector.extract_strided_slice %292 {offsets = [0, 0], sizes = [16, 128], strides = [1, 1]} : vector<16x256xf32> to vector<16x128xf32>
    %294 = arith.negf %293 : vector<16x128xf32>
    %295 = math.exp %294 : vector<16x128xf32>
    %cst_93 = arith.constant 1.000000e+00 : f32
    %296 = vector.broadcast %cst_93 : f32 to vector<16x128xf32>
    %297 = arith.addf %296, %295 : vector<16x128xf32>
    %298 = arith.divf %296, %297 : vector<16x128xf32>
    %299 = vector.extract_strided_slice %298 {offsets = [0, 0], sizes = [16, 64], strides = [1, 1]} : vector<16x128xf32> to vector<16x64xf32>
    %300 = vector.extract_strided_slice %298 {offsets = [0, 64], sizes = [16, 64], strides = [1, 1]} : vector<16x128xf32> to vector<16x64xf32>
    %301 = vector.extract_strided_slice %292 {offsets = [0, 128], sizes = [16, 64], strides = [1, 1]} : vector<16x256xf32> to vector<16x64xf32>
    %302 = math.tanh %301 : vector<16x64xf32>
    %303 = vector.extract_strided_slice %292 {offsets = [0, 192], sizes = [16, 64], strides = [1, 1]} : vector<16x256xf32> to vector<16x64xf32>
    %304 = arith.negf %303 : vector<16x64xf32>
    %305 = math.exp %304 : vector<16x64xf32>
    %cst_94 = arith.constant 1.000000e+00 : f32
    %306 = vector.broadcast %cst_94 : f32 to vector<16x64xf32>
    %307 = arith.addf %306, %305 : vector<16x64xf32>
    %308 = arith.divf %306, %307 : vector<16x64xf32>
    %309 = arith.mulf %300, %269 : vector<16x64xf32>
    %310 = arith.mulf %299, %302 : vector<16x64xf32>
    %311 = arith.addf %309, %310 : vector<16x64xf32>
    %312 = math.tanh %311 : vector<16x64xf32>
    %313 = arith.mulf %308, %312 : vector<16x64xf32>
    %314 = vector.extract_strided_slice %313 {offsets = [0, 0], sizes = [16, 32], strides = [1, 1]} : vector<16x64xf32> to vector<16x32xf32>
    %315 = arith.index_cast %c6_i32 : i32 to index
    %c0_95 = arith.constant 0 : index
    %c0_96 = arith.constant 0 : index
    %316 = vector.load %arg10[%315, %c0_95, %c0_96] : memref<8x16x64xf32, #tpu.memory_space<vmem>>, vector<1x16x32xf32>
    %317 = vector.shape_cast %316 : vector<1x16x32xf32> to vector<16x32xf32>
    %318 = vector.shape_cast %314 : vector<16x32xf32> to vector<1x16x32xf32>
    tpu.vector_store %arg10[%315, %c0_95, %c0_96], %318 {strides = array<i32>} : memref<8x16x64xf32, #tpu.memory_space<vmem>>, vector<1x16x32xf32>,
    %319 = vector.extract_strided_slice %313 {offsets = [0, 32], sizes = [16, 32], strides = [1, 1]} : vector<16x64xf32> to vector<16x32xf32>
    %320 = arith.index_cast %282 : i32 to index
    %c0_97 = arith.constant 0 : index
    %c32_98 = arith.constant 32 : index
    %321 = vector.load %arg10[%320, %c0_97, %c32_98] : memref<8x16x64xf32, #tpu.memory_space<vmem>>, vector<1x16x32xf32>
    %322 = vector.shape_cast %321 : vector<1x16x32xf32> to vector<16x32xf32>
    %323 = vector.shape_cast %319 : vector<16x32xf32> to vector<1x16x32xf32>
    tpu.vector_store %arg10[%320, %c0_97, %c32_98], %323 {strides = array<i32>} : memref<8x16x64xf32, #tpu.memory_space<vmem>>, vector<1x16x32xf32>,
    %c7_i32_99 = arith.constant 7 : i32
    %c7_i32_100 = arith.constant 7 : i32
    %324 = arith.subi %c7_i32_100, %c7_i32_99 : i32
    %325 = arith.index_cast %c7_i32_99 : i32 to index
    %c0_101 = arith.constant 0 : index
    %c0_102 = arith.constant 0 : index
    %326 = vector.load %arg9[%325, %c0_101, %c0_102] : memref<8x16x256xf32, #tpu.memory_space<vmem>>, vector<1x16x256xf32>
    %327 = vector.shape_cast %326 : vector<1x16x256xf32> to vector<16x256xf32>
    %328 = arith.index_cast %324 : i32 to index
    %c0_103 = arith.constant 0 : index
    %c0_104 = arith.constant 0 : index
    %329 = vector.load %arg9[%328, %c0_103, %c0_104] : memref<8x16x256xf32, #tpu.memory_space<vmem>>, vector<1x16x256xf32>
    %330 = vector.shape_cast %329 : vector<1x16x256xf32> to vector<16x256xf32>
    %331 = arith.select %28, %327, %330 : vector<16x256xi1>, vector<16x256xf32>
    %332 = arith.truncf %313 : vector<16x64xf32> to vector<16x64xbf16>
    %cst_105 = arith.constant dense<0.000000e+00> : vector<16x256xf32>
    %333 = tpu.matmul %332, %9, %cst_105 {dimension_numbers = #tpu.dot_dimension_numbers<[1], [0], [0], [1], [0, 0, 1, 1], [], []>} : vector<16x64xbf16>, vector<64x256xbf16>, vector<16x256xf32> -> vector<16x256xf32>
    %334 = arith.addf %331, %333 : vector<16x256xf32>
    %335 = vector.extract_strided_slice %334 {offsets = [0, 0], sizes = [16, 128], strides = [1, 1]} : vector<16x256xf32> to vector<16x128xf32>
    %336 = arith.negf %335 : vector<16x128xf32>
    %337 = math.exp %336 : vector<16x128xf32>
    %cst_106 = arith.constant 1.000000e+00 : f32
    %338 = vector.broadcast %cst_106 : f32 to vector<16x128xf32>
    %339 = arith.addf %338, %337 : vector<16x128xf32>
    %340 = arith.divf %338, %339 : vector<16x128xf32>
    %341 = vector.extract_strided_slice %340 {offsets = [0, 0], sizes = [16, 64], strides = [1, 1]} : vector<16x128xf32> to vector<16x64xf32>
    %342 = vector.extract_strided_slice %340 {offsets = [0, 64], sizes = [16, 64], strides = [1, 1]} : vector<16x128xf32> to vector<16x64xf32>
    %343 = vector.extract_strided_slice %334 {offsets = [0, 128], sizes = [16, 64], strides = [1, 1]} : vector<16x256xf32> to vector<16x64xf32>
    %344 = math.tanh %343 : vector<16x64xf32>
    %345 = vector.extract_strided_slice %334 {offsets = [0, 192], sizes = [16, 64], strides = [1, 1]} : vector<16x256xf32> to vector<16x64xf32>
    %346 = arith.negf %345 : vector<16x64xf32>
    %347 = math.exp %346 : vector<16x64xf32>
    %cst_107 = arith.constant 1.000000e+00 : f32
    %348 = vector.broadcast %cst_107 : f32 to vector<16x64xf32>
    %349 = arith.addf %348, %347 : vector<16x64xf32>
    %350 = arith.divf %348, %349 : vector<16x64xf32>
    %351 = arith.mulf %342, %311 : vector<16x64xf32>
    %352 = arith.mulf %341, %344 : vector<16x64xf32>
    %353 = arith.addf %351, %352 : vector<16x64xf32>
    %354 = math.tanh %353 : vector<16x64xf32>
    %355 = arith.mulf %350, %354 : vector<16x64xf32>
    %356 = vector.extract_strided_slice %355 {offsets = [0, 0], sizes = [16, 32], strides = [1, 1]} : vector<16x64xf32> to vector<16x32xf32>
    %357 = arith.index_cast %c7_i32_99 : i32 to index
    %c0_108 = arith.constant 0 : index
    %c0_109 = arith.constant 0 : index
    %358 = vector.load %arg10[%357, %c0_108, %c0_109] : memref<8x16x64xf32, #tpu.memory_space<vmem>>, vector<1x16x32xf32>
    %359 = vector.shape_cast %358 : vector<1x16x32xf32> to vector<16x32xf32>
    %360 = vector.shape_cast %356 : vector<16x32xf32> to vector<1x16x32xf32>
    tpu.vector_store %arg10[%357, %c0_108, %c0_109], %360 {strides = array<i32>} : memref<8x16x64xf32, #tpu.memory_space<vmem>>, vector<1x16x32xf32>,
    %361 = vector.extract_strided_slice %355 {offsets = [0, 32], sizes = [16, 32], strides = [1, 1]} : vector<16x64xf32> to vector<16x32xf32>
    %362 = arith.index_cast %324 : i32 to index
    %c0_110 = arith.constant 0 : index
    %c32_111 = arith.constant 32 : index
    %363 = vector.load %arg10[%362, %c0_110, %c32_111] : memref<8x16x64xf32, #tpu.memory_space<vmem>>, vector<1x16x32xf32>
    %364 = vector.shape_cast %363 : vector<1x16x32xf32> to vector<16x32xf32>
    %365 = vector.shape_cast %361 : vector<16x32xf32> to vector<1x16x32xf32>
    tpu.vector_store %arg10[%362, %c0_110, %c32_111], %365 {strides = array<i32>} : memref<8x16x64xf32, #tpu.memory_space<vmem>>, vector<1x16x32xf32>,
    %c8_i32 = arith.constant 8 : i32
    %c0_112 = arith.constant 0 : index
    %c0_113 = arith.constant 0 : index
    %c0_114 = arith.constant 0 : index
    %366 = vector.load %arg10[%c0_112, %c0_113, %c0_114] : memref<8x16x64xf32, #tpu.memory_space<vmem>>, vector<8x16x64xf32>
    %367 = vector.shape_cast %366 : vector<8x16x64xf32> to vector<128x64xf32>
    %368 = arith.truncf %367 : vector<128x64xf32> to vector<128x64xbf16>
    %c0_115 = arith.constant 0 : index
    %c0_116 = arith.constant 0 : index
    %369 = vector.load %arg4[%c0_115, %c0_116] : memref<64x32xbf16, #tpu.memory_space<vmem>>, vector<64x32xbf16>
    %cst_117 = arith.constant dense<0.000000e+00> : vector<128x32xf32>
    %370 = tpu.matmul %368, %369, %cst_117 {dimension_numbers = #tpu.dot_dimension_numbers<[1], [0], [0], [1], [0, 0, 1, 1], [], []>} : vector<128x64xbf16>, vector<64x32xbf16>, vector<128x32xf32> -> vector<128x32xf32>
    %c0_118 = arith.constant 0 : index
    %c0_119 = arith.constant 0 : index
    %371 = vector.load %arg5[%c0_118, %c0_119] : memref<1x32xf32, #tpu.memory_space<vmem>>, vector<1x32xf32>
    %372 = vector.broadcast %371 : vector<1x32xf32> to vector<128x32xf32>
    %373 = arith.addf %370, %372 : vector<128x32xf32>
    %cst_120 = arith.constant 0.000000e+00 : f32
    %374 = vector.broadcast %cst_120 : f32 to vector<128x32xf32>
    %375 = arith.maximumf %373, %374 : vector<128x32xf32>
    %c0_121 = arith.constant 0 : index
    %c0_122 = arith.constant 0 : index
    %376 = vector.load %arg6[%c0_121, %c0_122] : memref<1x32xbf16, #tpu.memory_space<vmem>>, vector<1x32xbf16>
    %377 = arith.truncf %375 : vector<128x32xf32> to vector<128x32xbf16>
    %cst_123 = arith.constant dense<0.000000e+00> : vector<1x128xf32>
    %378 = tpu.matmul %376, %377, %cst_123 {dimension_numbers = #tpu.dot_dimension_numbers<[1], [1], [0], [0], [0, 0, 1, 0], [], []>} : vector<1x32xbf16>, vector<128x32xbf16>, vector<1x128xf32> -> vector<1x128xf32>
    %c0_124 = arith.constant 0 : index
    %c0_125 = arith.constant 0 : index
    %379 = vector.load %arg7[%c0_124, %c0_125] : memref<1x1xf32, #tpu.memory_space<vmem>>, vector<1x1xf32>
    %380 = vector.broadcast %379 : vector<1x1xf32> to vector<1x128xf32>
    %381 = arith.addf %378, %380 : vector<1x128xf32>
    %c0_126 = arith.constant 0 : index
    %c0_127 = arith.constant 0 : index
    %382 = vector.load %arg8[%c0_126, %c0_127] : memref<1x128xf32, #tpu.memory_space<vmem>>, vector<1x128xf32>
    tpu.vector_store %arg8[%c0_126, %c0_127], %381 {strides = array<i32>} : memref<1x128xf32, #tpu.memory_space<vmem>>, vector<1x128xf32>,
    return
  }
}

</mosaic_0001>

<bundles_post_ra>
// kernel: binding_predictor_forward.1
= control target key start
LH: loop header
LB: loop body
LE: loop exit
PB: predicated region body
PF: predicated region fallthrough
CT: control target
= control target key end

     0   :  { %v2861_v1 = vmov 0   ;;  %vm124_vm0 = vcmask 261120   ;;  %v54_v21 = vlaneseq  ;;  %vm384_vm3 = vcmask 523264   ;;  %s2851_s1 = inlined_call_operand.vmem [shape: bf16[32,256], index: 1, kind: input, shape index: {}]   ;;  %s2852_s0 = inlined_call_operand.vmem [shape: bf16[8,16,32], index: 0, kind: input, shape index: {}]   ;;  %s2853_s3 = inlined_call_operand.vmem [shape: bf16[64,256], index: 3, kind: input, shape index: {}]   ;;  %s2854_s2 = inlined_call_operand.vmem [shape: f32[1,256], index: 2, kind: input, shape index: {}]   ;;  %s2855_s4 = inlined_call_operand.vmem [shape: bf16[64,32], index: 4, kind: input, shape index: {}]   ;;  %s2856_s7 = inlined_call_operand.<no memory space> [shape: f32[1,1], index: 7, kind: input, shape index: {}]   ;;  %s2857_s5 = inlined_call_operand.vmem [shape: f32[1,32], index: 5, kind: input, shape index: {}]   ;;  %s2858_s6 = inlined_call_operand.vmem [shape: bf16[1,32], index: 6, kind: input, shape index: {}]   ;;  %s2859_s8 = inlined_call_operand.vmem [shape: f32[1,128], index: 8, kind: output, shape index: {}]  }
   0x1   :  { %v1802_v0 = vld [vmem:[%s2851_s1 + $0x14] ss:$8 sps:$4 sm:$0xff]   ;;  %181 = vmatprep.mubr.bf16.mxu0 %v2861_v1  ;;  %546 = vmatprep.mubr.bf16.mxu1 %v2861_v1  ;;  %v1804_v2 = vld [vmem:[%s2851_s1 + $0x10] ss:$8 sps:$4 sm:$0xff]   ;;  %v1805_v3 = vld [vmem:[%s2851_s1 + $0x4] ss:$8 sps:$4 sm:$0xff]  }
   0x2   :  { %1800 = vset.pattern.permute.xlu1 %v2861_v1  ;;  %1801 = vset.pattern.permute.xlu0 %v2861_v1  ;;  %v1807_v4 = vld [vmem:[%s2851_s1] ss:$8 sps:$4 sm:$0xff]   ;;  %v2092_v5 = vld [vmem:[%s2853_s3 + $0x34] ss:$8 sps:$4 sm:$0xff]   ;;  %v2097_v6 = vld [vmem:[%s2853_s3 + $0x30] ss:$8 sps:$4 sm:$0xff]  }
   0x3   :  { %161 = vmatprep.subr.bf16.mxu0 %v1802_v0  ;;  %v1808_v7 = vld [vmem:[%s2852_s0] sm:$0xff]   ;;  %522 = vmatprep.subr.bf16.mxu1 %v2092_v5  ;;  %v2122_v10 = vld [vmem:[%s2853_s3 + $0x14] ss:$8 sps:$4 sm:$0xff]   ;;  %v1812_v11 = vld [vmem:[%s2852_s0 + $0x8] sm:$0xff]   ;;  %v2197_v22 = vshrl.u32 %v54_v21, 7  ;;  %v303_v47 = vand.u32 127, %v54_v21 }
   0x4   :  { %162 = vmatpush1.bf16.msra.mxu0 %v1804_v2  ;;  %v2106_v8 = vld [vmem:[%s2853_s3 + $0x24] ss:$8 sps:$4 sm:$0xff]   ;;  %523 = vmatpush1.bf16.msra.mxu1 %v2097_v6  ;;  %v2115_v9 = vld [vmem:[%s2853_s3 + $0x20] ss:$8 sps:$4 sm:$0xff]   ;;  %v2133_v12 = vld [vmem:[%s2853_s3 + $0x10] ss:$8 sps:$4 sm:$0xff]  }
   0x5   :  { %163 = vmatprep.subr.bf16.mxu0 %v1805_v3  ;;  %524 = vmatprep.subr.bf16.mxu1 %v2106_v8  ;;  %v2139_v13 = vld [vmem:[%s2853_s3 + $0x4] ss:$8 sps:$4 sm:$0xff]   ;;  %v2148_v14 = vld [vmem:[%s2853_s3] ss:$8 sps:$4 sm:$0xff]   ;;  %v1813_v15 = vld [vmem:[%s2852_s0 + $0x10] sm:$0xff]   ;;  %2868 = vst [vmem:[#allocation5_spill] sm:$0xff] %v2197_v22 }
   0x6   :  { %v1817_v16 = vld [vmem:[%s2852_s0 + $0x18] sm:$0xff]   ;;  %v1818_v17 = vld [vmem:[%s2852_s0 + $0x20] sm:$0xff]   ;;  %v1822_v18 = vld [vmem:[%s2852_s0 + $0x28] sm:$0xff]   ;;  %v2860_v25 = vsub.s32 0, %v2197_v22  ;;  %v60_v28 = vsub.s32 1, %v2197_v22  ;;  %v304_v52 = vadd.s32 128, %v303_v47 }
   0x7   :  { %v1823_v19 = vld [vmem:[%s2852_s0 + $0x30] sm:$0xff]   ;;  %v1827_v20 = vld [vmem:[%s2852_s0 + $0x38] sm:$0xff]   ;;  %v52_v26 = vld [vmem:[%s2854_s2] sm:$0x3]  ;;  %v309_v55 = vand.u32 63, %v303_v47  ;;  %s2025_s2 = smov 64  }
   0x8   :  { %164 = vmatpush1.bf16.msra.mxu0 %v1807_v4  ;;  %525 = vmatpush1.bf16.msra.mxu1 %v2115_v9  ;;  %v2214_v30 = vrot.slane %v52_v26, %v2860_v25  ;;  %v2216_v32 = vrot.slane %v52_v26, %v60_v28  ;;  %v316_v58 = vand.u32 63, %v304_v52  ;;  %vm490_vm4 = vcmask 523520  }
   0x9   :  { %396 = vmatprep.subr.bf16.mxu0 %v2092_v5  ;;  %526 = vmatprep.subr.bf16.mxu1 %v2122_v10  ;;  %vm2254_vm1 = vcmp.lt.s32.totalorder %v309_v55, 32  ;;  %vm2027_vm5 = vmmov 0  }
   0xa   :  { %vm2261_vm2 = vcmp.lt.s32.totalorder %v316_v58, 32 }
   0xb   :  { %1662 = vmatmul.mubr.msk.bf16.vlgmr.msra.gmra.mxu0 %vm124_vm0, %v1808_v7 }
   0xc   :  { %397 = vmatpush1.bf16.msra.mxu0 %v2097_v6  ;;  %191 = vmatprep.mubr.bf16.mxu0 %v2861_v1 }
   0xd   :  { %398 = vmatprep.subr.bf16.mxu0 %v2106_v8  ;;  %527 = vmatpush1.bf16.msra.mxu1 %v2133_v12 }
   0xe   :  { %528 = vmatprep.subr.bf16.mxu1 %v2139_v13 }
  0x10   :  { %399 = vmatpush1.bf16.msra.mxu0 %v2115_v9 }
  0x11   :  { %400 = vmatprep.subr.bf16.mxu0 %v2122_v10  ;;  %529 = vmatpush1.bf16.msra.mxu1 %v2148_v14 }
  0x12   :  { %648 = vmatprep.subr.bf16.mxu1 %v2092_v5 }
  0x13   :  { %1663 = vmatmul.mubr.msk.bf16.gmra.mxu0 %vm124_vm0, %v1812_v11 }
  0x14   :  { %201 = vmatprep.mubr.bf16.mxu0 %v2861_v1  ;;  %401 = vmatpush1.bf16.msra.mxu0 %v2133_v12 }
  0x15   :  { %402 = vmatprep.subr.bf16.mxu0 %v2139_v13 }
  0x18   :  { %403 = vmatpush1.bf16.msra.mxu0 %v2148_v14 }
  0x19   :  { %898 = vmatprep.subr.bf16.mxu0 %v2092_v5 }
  0x1b   :  { %1664 = vmatmul.mubr.msk.bf16.gmra.mxu0 %vm124_vm0, %v1813_v15 }
  0x1c   :  { %211 = vmatprep.mubr.bf16.mxu0 %v2861_v1 }
  0x23   :  { %1665 = vmatmul.mubr.msk.bf16.gmra.mxu0 %vm124_vm0, %v1817_v16 }
  0x24   :  { %221 = vmatprep.mubr.bf16.mxu0 %v2861_v1 }
  0x2b   :  { %1666 = vmatmul.mubr.msk.bf16.gmra.mxu0 %vm124_vm0, %v1818_v17 }
  0x2c   :  { %231 = vmatprep.mubr.bf16.mxu0 %v2861_v1 }
  0x33   :  { %1667 = vmatmul.mubr.msk.bf16.gmra.mxu0 %vm124_vm0, %v1822_v18 }
  0x34   :  { %241 = vmatprep.mubr.bf16.mxu0 %v2861_v1 }
  0x3b   :  { %1668 = vmatmul.mubr.msk.bf16.gmra.mxu0 %vm124_vm0, %v1823_v19 }
  0x3c   :  { %251 = vmatprep.mubr.bf16.mxu0 %v2861_v1 }
  0x43   :  { %1669 = vmatmul.mubr.msk.bf16.gmra.mxu0 %vm124_vm0, %v1827_v20 }
  0x44   :  { %420 = vmatprep.mubr.bf16.mxu0 %v2861_v1 }
  0x4b   :  { %421 = vmatmul.mubr.bf16.vlgmr.msra.gmra.mxu0 %v2861_v1 }
  0x4c   :  { %899 = vmatpush1.bf16.msra.mxu0 %v2097_v6  ;;  %922 = vmatprep.mubr.bf16.mxu0 %v2861_v1 }
  0x4d   :  { %900 = vmatprep.subr.bf16.mxu0 %v2106_v8 }
  0x50   :  { %901 = vmatpush1.bf16.msra.mxu0 %v2115_v9 }
  0x51   :  { %902 = vmatprep.subr.bf16.mxu0 %v2122_v10 }
  0x54   :  { %903 = vmatpush1.bf16.msra.mxu0 %v2133_v12 }
  0x55   :  { %904 = vmatprep.subr.bf16.mxu0 %v2139_v13 }
  0x58   :  { %905 = vmatpush1.bf16.msra.mxu0 %v2148_v14 }
  0x59   :  { %1142 = vmatprep.subr.bf16.mxu0 %v2092_v5 }
  0xcb   :  { %v2199_v23 = vpop.f32.mrf.mxu0 }
  0xcc   :  { %v2388_v47 = vadd.f32 %v2199_v23, %v2214_v30 }
  0xcd   :  { %v2201_v24 = vpop.f32.mrf.mxu0 }
  0xcf   :  { %v2207_v27 = vpop.f32.mrf.mxu0 }
  0xd0   :  { %v2414_v16 = vadd.f32 %v2207_v27, %v2214_v30 }
  0xd1   :  { %v2210_v29 = vpop.f32.mrf.mxu0 }
  0xd2   :  { %v2425_v20 = vadd.f32 %v2210_v29, %v2216_v32 }
  0xd3   :  { %v193_v31 = vpop.f32.mrf.mxu0 }
  0xd4   :  { %v2219_v33 = vadd.f32 %v193_v31, %v2214_v30 }
  0xd5   :  { %v195_v34 = vpop.f32.mrf.mxu0 }
  0xd6   :  { %v2222_v35 = vadd.f32 %v195_v34, %v2216_v32 }
  0xd7   :  { %v197_v36 = vpop.f32.mrf.mxu0 }
  0xd8   :  { %v2225_v37 = vadd.f32 %v197_v36, %v2214_v30 }
  0xd9   :  { %v199_v38 = vpop.f32.mrf.mxu0 }
  0xda   :  { %v2228_v39 = vadd.f32 %v199_v38, %v2216_v32 }
  0xdb   :  { %v203_v40 = vpop.f32.mrf.mxu0 }
  0xdc   :  { %v2231_v41 = vadd.f32 %v203_v40, %v2214_v30 }
  0xdd   :  { %v205_v42 = vpop.f32.mrf.mxu0 }
  0xde   :  { %v2234_v43 = vadd.f32 %v205_v42, %v2216_v32 }
  0xdf   :  { %v207_v44 = vpop.f32.mrf.mxu0 }
  0xe0   :  { %v2237_v45 = vadd.f32 %v207_v44, %v2214_v30 }
  0xe1   :  { %v209_v46 = vpop.f32.mrf.mxu0 }
  0xe2   :  { %v2240_v48 = vadd.f32 %v209_v46, %v2216_v32 }
  0xe3   :  { %v213_v49 = vpop.f32.mrf.mxu0 }
  0xe4   :  { %v2243_v50 = vadd.f32 %v213_v49, %v2214_v30 }
  0xe5   :  { %v215_v51 = vpop.f32.mrf.mxu0 }
  0xe6   :  { %v2246_v53 = vadd.f32 %v215_v51, %v2216_v32 }
  0xe7   :  { %v217_v54 = vpop.f32.mrf.mxu0 }
  0xe8   :  { %v2249_v56 = vadd.f32 %v217_v54, %v2214_v30 }
  0xe9   :  { %v219_v57 = vpop.f32.mrf.mxu0 }
  0xea   :  { %v2252_v59 = vadd.f32 %v219_v57, %v2216_v32 }
  0xeb   :  { %v223_v60 = vpop.f32.mrf.mxu0 }
  0xec   :  { %v2259_v62 = vadd.f32 %v223_v60, %v2214_v30 }
  0xed   :  { %v225_v63 = vpop.f32.mrf.mxu0 }
  0xee   :  { %v2266_v2 = vadd.f32 %v225_v63, %v2216_v32 }
  0xef   :  { %v227_v7 = vpop.f32.mrf.mxu0 }
  0xf0   :  { %v2277_v11 = vadd.f32 %v227_v7, %v2214_v30 }
  0xf1   :  { %v229_v17 = vpop.f32.mrf.mxu0 }
  0xf2   :  { %v2288_v18 = vadd.f32 %v229_v17, %v2216_v32 }
  0xf3   :  { %v233_v21 = vpop.f32.mrf.mxu0 }
  0xf4   :  { %v2299_v26 = vadd.f32 %v233_v21, %v2214_v30  ;;  %v2403_v21 = vadd.f32 %v2201_v24, %v2216_v32 }
  0xf5   :  { %v235_v34 = vpop.f32.mrf.mxu0 }
  0xf6   :  { %v2310_v36 = vadd.f32 %v235_v34, %v2216_v32 }
  0xf7   :  { %v237_v42 = vpop.f32.mrf.mxu0 }
  0xf8   :  { %v2321_v44 = vadd.f32 %v237_v42, %v2214_v30 }
  0xf9   :  { %v239_v49 = vpop.f32.mrf.mxu0 }
  0xfa   :  { %v2332_v51 = vadd.f32 %v239_v49, %v2216_v32 }
  0xfb   :  { %v243_v55 = vpop.f32.mrf.mxu0 }
  0xfc   :  { %v2343_v57 = vadd.f32 %v243_v55, %v2214_v30 }
  0xfd   :  { %v245_v63 = vpop.f32.mrf.mxu0 }
  0xfe   :  { %v2354_v7 = vadd.f32 %v245_v63, %v2216_v32  ;;  %v503_v17 = vsel %vm2254_vm1, %v2219_v33, %v2343_v57 }
  0xff   :  { %v247_v34 = vpop.f32.mrf.mxu0 }
 0x100   :  { %v2365_v42 = vadd.f32 %v247_v34, %v2214_v30 }
 0x101   :  { %v249_v63 = vpop.f32.mrf.mxu0 }
 0x102   :  { %v2376_v25 = vadd.f32 %v249_v63, %v2216_v32  ;;  %v505_v34 = vsel %vm2254_vm1, %v2225_v37, %v2365_v42 }
 0x103   :  { %v253_v60 = vpop.f32.mrf.mxu0 }
 0x104   :  { %v2391_v55 = vadd.f32 %v253_v60, %v2214_v30 }
 0x105   :  { %v255_v40 = vpop.f32.mrf.mxu0 }
 0x106   :  { %v2406_v23 = vadd.f32 %v255_v40, %v2216_v32 }
 0x107   :  { %v257_v31 = vpop.f32.mrf.mxu0 }
 0x108   :  { %v2417_v54 = vadd.f32 %v257_v31, %v2214_v30  ;;  %v340_v30 = vsel %vm2254_vm1, %v2388_v47, %v2391_v55 }
 0x109   :  { %v259_v40 = vpop.f32.mrf.mxu0 }
 0x10a   :  { %v2428_v60 = vadd.f32 %v259_v40, %v2216_v32  ;;  %v342_v40 = vsel %vm2254_vm1, %v2414_v16, %v2417_v54 }
 0x10b   :  { %v422_v31 = vpop.f32.mrf.mxu0 }
 0x10c   :  { %v431_v24 = vadd.f32 %v422_v31, %v340_v30  ;;  %v341_v30 = vsel %vm2261_vm2, %v2403_v21, %v2406_v23  ;;  %v2903_v61 = vsel %vm2261_vm2, %v2428_v60, %v2425_v20 }
 0x10d   :  { %v424_v4 = vpop.f32.mrf.mxu0 }
 0x10e   :  { %v1678_v32 = vmul.f32 -1.442695, %v431_v24  ;;  %v432_v31 = vadd.f32 %v424_v4, %v341_v30  ;;  %v343_v24 = vsel %vm2261_vm2, %v2425_v20, %v2428_v60 }
 0x10f   :  { %v426_v27 = vpop.f32.mrf.mxu0 }
 0x110   :  { %1832 = vpow2.f32 %v1678_v32  ;;  %v433_v28 = vadd.f32 %v426_v27, %v342_v40  ;;  %v1680_v30 = vmul.f32 -1.442695, %v432_v31 }
 0x111   :  { %v428_v19 = vpop.f32.mrf.mxu0 }
 0x112   :  { %v1679_v15 = vmul.f32 -1.442695, %v433_v28  ;;  %v434_v58 = vadd.f32 %v428_v19, %v343_v24 }
 0x114   :  { %1834 = vpow2.f32 %v1679_v15  ;;  %v1681_v52 = vmul.f32 -1.442695, %v434_v58 }
 0x115   :  { %1836 = vtanh.f32 %v432_v31 }
 0x11d   :  { %v1833_v29 = vpop.eup %1832 }
 0x11e   :  { %v441_v3 = vadd.f32 1.0, %v1833_v29 }
 0x120   :  { %1838 = vrcp.f32 %v441_v3 }
 0x121   :  { %v1835_v27 = vpop.eup %1834  ;;  %1840 = vtanh.f32 %v434_v58 }
 0x122   :  { %v442_v28 = vadd.f32 1.0, %v1835_v27  ;;  %v1837_v15 = vpop.eup %1836 }
 0x124   :  { %1842 = vrcp.f32 %v442_v28 }
 0x125   :  { %1844 = vpow2.f32 %v1680_v30 }
 0x126   :  { %1846 = vpow2.f32 %v1681_v52 }
 0x12d   :  { %v1839_v32 = vpop.eup %1838 }
 0x12e   :  { %v463_v40 = vmul.f32 %v1839_v32, %v1837_v15  ;;  %v1841_v46 = vpop.eup %1840  ;;  %v461_v24 = vmul.f32 0.0, %v1839_v32 }
 0x130   :  { %467 = vrot.lane.b32.xlu0 %v463_v40, %s2025_s2 }
 0x131   :  { %v1843_v4 = vpop.eup %1842 }
 0x132   :  { %v464_v29 = vmul.f32 %v1843_v4, %v1841_v46  ;;  %v1845_v3 = vpop.eup %1844  ;;  %v462_v63 = vmul.f32 0.0, %v1843_v4 }
 0x133   :  { %v1847_v19 = vpop.eup %1846  ;;  %v455_v27 = vadd.f32 1.0, %v1845_v3 }
 0x134   :  { %469 = vrot.lane.b32.xlu0 %v464_v29, %s2025_s2  ;;  %v456_v15 = vadd.f32 1.0, %v1847_v19 }
 0x135   :  { %1848 = vrcp.f32 %v455_v27 }
 0x142   :  { %v1849_v31 = vpop.eup %1848 }
 0x1a2   :  { %v468_v28 = vpop.permute.xlu0 %467 }
 0x1a3   :  { %v2456_v38 = vadd.f32 %v468_v28, %v461_v24 }
 0x1a5   :  { %1850 = vtanh.f32 %v2456_v38 }
 0x1a6   :  { %v470_v49 = vpop.permute.xlu0 %469  ;;  %1852 = vrcp.f32 %v456_v15  ;;  %v2874_v15 = vsel %vm2261_vm2, %v2222_v35, %v2354_v7 }
 0x1a7   :  { %v474_v46 = vadd.f32 %v470_v49, %v462_v63 }
 0x1a9   :  { %1854 = vtanh.f32 %v474_v46 }
 0x1b2   :  { %v1851_v58 = vpop.eup %1850 }
 0x1b3   :  { %v1853_v40 = vpop.eup %1852  ;;  %v2459_v29 = vmul.f32 %v1851_v58, %v1849_v31 }
 0x1b6   :  { %v1855_v52 = vpop.eup %1854 }
 0x1b7   :  { %v2461_v32 = vmul.f32 %v1855_v52, %v1853_v40  ;;  %v2875_v52 = vsel %vm2261_vm2, %v2228_v39, %v2376_v25 }
 0x1b9   :  { %2873 = vst [vmem:[#allocation6_spill] sm:$0xff] %v2461_v32  ;;  %v507_v30 = vpack.c.bf16 %v2461_v32, %v2459_v29 }
 0x1bb   :  { %509 = vrot.lane.b32.xlu1 %v507_v30, %s2025_s2 }
 0x1c0   :  { %v2905_v20 = vld [vmem:[#allocation6_spill] sm:$0xff] }
 0x22d   :  { %v510_v4 = vpop.permute.xlu1 %509 }
 0x22e   :  { %1682 = vmatmul.mubr.msk.bf16.vlgmr.msra.gmra.mxu1 %vm384_vm3, %v510_v4 }
 0x22f   :  { %649 = vmatpush1.bf16.msra.mxu1 %v2097_v6  ;;  %672 = vmatprep.mubr.bf16.mxu1 %v2861_v1 }
 0x230   :  { %650 = vmatprep.subr.bf16.mxu1 %v2106_v8 }
 0x233   :  { %651 = vmatpush1.bf16.msra.mxu1 %v2115_v9 }
 0x234   :  { %652 = vmatprep.subr.bf16.mxu1 %v2122_v10 }
 0x237   :  { %653 = vmatpush1.bf16.msra.mxu1 %v2133_v12 }
 0x238   :  { %654 = vmatprep.subr.bf16.mxu1 %v2139_v13 }
 0x23b   :  { %655 = vmatpush1.bf16.msra.mxu1 %v2148_v14 }
 0x23c   :  { %774 = vmatprep.subr.bf16.mxu1 %v2092_v5 }
 0x2ee   :  { %v548_v49 = vpop.f32.mrf.mxu1 }
 0x2ef   :  { %v557_v63 = vadd.f32 %v548_v49, %v503_v17 }
 0x2f0   :  { %v550_v3 = vpop.f32.mrf.mxu1 }
 0x2f1   :  { %v1683_v19 = vmul.f32 -1.442695, %v557_v63  ;;  %v558_v31 = vadd.f32 %v550_v3, %v2874_v15 }
 0x2f2   :  { %v552_v24 = vpop.f32.mrf.mxu1 }
 0x2f3   :  { %1856 = vpow2.f32 %v1683_v19  ;;  %v559_v27 = vadd.f32 %v552_v24, %v505_v34 }
 0x2f4   :  { %v554_v58 = vpop.f32.mrf.mxu1 }
 0x2f5   :  { %v1684_v28 = vmul.f32 -1.442695, %v559_v27  ;;  %v560_v30 = vadd.f32 %v554_v58, %v2875_v52 }
 0x2f7   :  { %1858 = vpow2.f32 %v1684_v28  ;;  %v1685_v28 = vmul.f32 -1.442695, %v558_v31  ;;  %v1686_v15 = vmul.f32 -1.442695, %v560_v30 }
 0x2f8   :  { %1860 = vtanh.f32 %v558_v31 }
 0x300   :  { %v1857_v17 = vpop.eup %1856 }
 0x301   :  { %v567_v40 = vadd.f32 1.0, %v1857_v17 }
 0x303   :  { %1862 = vrcp.f32 %v567_v40 }
 0x304   :  { %v1859_v34 = vpop.eup %1858  ;;  %1864 = vtanh.f32 %v560_v30 }
 0x305   :  { %v568_v4 = vadd.f32 1.0, %v1859_v34  ;;  %v1861_v49 = vpop.eup %1860 }
 0x307   :  { %1866 = vrcp.f32 %v568_v4 }
 0x308   :  { %1868 = vpow2.f32 %v1685_v28 }
 0x309   :  { %1870 = vpow2.f32 %v1686_v15 }
 0x310   :  { %v1863_v63 = vpop.eup %1862 }
 0x311   :  { %v589_v19 = vmul.f32 %v1863_v63, %v1861_v49  ;;  %v1865_v24 = vpop.eup %1864  ;;  %v587_v40 = vmul.f32 %v1863_v63, %v2456_v38  ;;  %v2879_v63 = vsel %vm2254_vm1, %v2231_v41, %v2299_v26 }
 0x313   :  { %593 = vrot.lane.b32.xlu1 %v589_v19, %s2025_s2 }
 0x314   :  { %v1867_v3 = vpop.eup %1866 }
 0x315   :  { %v590_v27 = vmul.f32 %v1867_v3, %v1865_v24  ;;  %v1869_v58 = vpop.eup %1868  ;;  %v588_v49 = vmul.f32 %v1867_v3, %v474_v46 }
 0x316   :  { %v1871_v17 = vpop.eup %1870  ;;  %v581_v52 = vadd.f32 1.0, %v1869_v58 }
 0x317   :  { %595 = vrot.lane.b32.xlu0 %v590_v27, %s2025_s2  ;;  %v582_v1 = vadd.f32 1.0, %v1871_v17 }
 0x318   :  { %1872 = vrcp.f32 %v581_v52  ;;  %v2880_v52 = vsel %vm2254_vm1, %v2237_v45, %v2321_v44 }
 0x325   :  { %v1873_v24 = vpop.eup %1872 }
 0x385   :  { %v594_v34 = vpop.permute.xlu1 %593 }
 0x386   :  { %v599_v4 = vadd.f32 %v594_v34, %v587_v40 }
 0x388   :  { %1874 = vtanh.f32 %v599_v4 }
 0x389   :  { %v596_v22 = vpop.permute.xlu0 %595  ;;  %1876 = vrcp.f32 %v582_v1  ;;  %v2878_v1 = vmov 0  }
 0x38a   :  { %v600_v19 = vadd.f32 %v596_v22, %v588_v49 }
 0x38c   :  { %1878 = vtanh.f32 %v600_v19 }
 0x395   :  { %v1875_v31 = vpop.eup %1874 }
 0x396   :  { %v1877_v30 = vpop.eup %1876  ;;  %v2499_v28 = vmul.f32 %v1875_v31, %v1873_v24  ;;  %v2881_v24 = vsel %vm2261_vm2, %v2234_v43, %v2310_v36 }
 0x398   :  { %2876 = vst [vmem:[#allocation7_spill] sm:$0xff] %v2499_v28 }
 0x399   :  { %v1879_v27 = vpop.eup %1878 }
 0x39a   :  { %v2501_v15 = vmul.f32 %v1879_v27, %v1877_v30 }
 0x39c   :  { %2877 = vst [vmem:[#allocation8_spill] sm:$0xff] %v2501_v15  ;;  %v633_v38 = vpack.c.bf16 %v2501_v15, %v2499_v28 }
 0x39e   :  { %635 = vrot.lane.b32.xlu1 %v633_v38, %s2025_s2 }
 0x39f   :  { %v2904_v0 = vld [vmem:[#allocation7_spill] sm:$0xff] }
 0x3a3   :  { %v2906_v60 = vld [vmem:[#allocation8_spill] sm:$0xff] }
 0x410   :  { %v636_v46 = vpop.permute.xlu1 %635 }
 0x411   :  { %1687 = vmatmul.mubr.msk.bf16.vlgmr.msra.gmra.mxu1 %vm384_vm3, %v636_v46  ;;  %v2882_v46 = vsel %vm2261_vm2, %v2240_v48, %v2332_v51 }
 0x412   :  { %775 = vmatpush1.bf16.msra.mxu1 %v2097_v6  ;;  %798 = vmatprep.mubr.bf16.mxu1 %v2878_v1 }
 0x413   :  { %776 = vmatprep.subr.bf16.mxu1 %v2106_v8 }
 0x416   :  { %777 = vmatpush1.bf16.msra.mxu1 %v2115_v9 }
 0x417   :  { %778 = vmatprep.subr.bf16.mxu1 %v2122_v10 }
 0x41a   :  { %779 = vmatpush1.bf16.msra.mxu1 %v2133_v12 }
 0x41b   :  { %780 = vmatprep.subr.bf16.mxu1 %v2139_v13 }
 0x41e   :  { %781 = vmatpush1.bf16.msra.mxu1 %v2148_v14 }
 0x41f   :  { %1020 = vmatprep.subr.bf16.mxu1 %v2092_v5 }
 0x4d1   :  { %v674_v22 = vpop.f32.mrf.mxu1 }
 0x4d2   :  { %v683_v3 = vadd.f32 %v674_v22, %v2879_v63 }
 0x4d3   :  { %v676_v58 = vpop.f32.mrf.mxu1 }
 0x4d4   :  { %v1688_v17 = vmul.f32 -1.442695, %v683_v3  ;;  %v684_v31 = vadd.f32 %v676_v58, %v2881_v24 }
 0x4d5   :  { %v678_v40 = vpop.f32.mrf.mxu1 }
 0x4d6   :  { %1880 = vpow2.f32 %v1688_v17  ;;  %v685_v34 = vadd.f32 %v678_v40, %v2880_v52  ;;  %v1690_v24 = vmul.f32 -1.442695, %v684_v31 }
 0x4d7   :  { %v680_v30 = vpop.f32.mrf.mxu1 }
 0x4d8   :  { %v1689_v49 = vmul.f32 -1.442695, %v685_v34  ;;  %v686_v22 = vadd.f32 %v680_v30, %v2882_v46 }
 0x4da   :  { %1882 = vpow2.f32 %v1689_v49 }
 0x4db   :  { %1884 = vtanh.f32 %v684_v31 }
 0x4e3   :  { %v1881_v27 = vpop.eup %1880 }
 0x4e4   :  { %v693_v38 = vadd.f32 1.0, %v1881_v27  ;;  %v1691_v27 = vmul.f32 -1.442695, %v686_v22 }
 0x4e6   :  { %1886 = vrcp.f32 %v693_v38 }
 0x4e7   :  { %v1883_v63 = vpop.eup %1882  ;;  %1888 = vtanh.f32 %v686_v22 }
 0x4e8   :  { %v694_v3 = vadd.f32 1.0, %v1883_v63  ;;  %v1885_v17 = vpop.eup %1884 }
 0x4ea   :  { %1890 = vrcp.f32 %v694_v3 }
 0x4eb   :  { %1892 = vpow2.f32 %v1690_v24 }
 0x4ec   :  { %1894 = vpow2.f32 %v1691_v27 }
 0x4f3   :  { %v1887_v40 = vpop.eup %1886 }
 0x4f4   :  { %v715_v52 = vmul.f32 %v1887_v40, %v1885_v17  ;;  %v1889_v34 = vpop.eup %1888  ;;  %v713_v46 = vmul.f32 %v1887_v40, %v599_v4 }
 0x4f6   :  { %719 = vrot.lane.b32.xlu0 %v715_v52, %s2025_s2 }
 0x4f7   :  { %v1891_v58 = vpop.eup %1890 }
 0x4f8   :  { %v716_v49 = vmul.f32 %v1891_v58, %v1889_v34  ;;  %v1893_v30 = vpop.eup %1892  ;;  %v714_v28 = vmul.f32 %v1891_v58, %v600_v19 }
 0x4f9   :  { %v1895_v38 = vpop.eup %1894  ;;  %v707_v63 = vadd.f32 1.0, %v1893_v30 }
 0x4fa   :  { %721 = vrot.lane.b32.xlu1 %v716_v49, %s2025_s2  ;;  %v708_v32 = vadd.f32 1.0, %v1895_v38  ;;  %v2885_v38 = vsel %vm2254_vm1, %v2249_v56, %v2277_v11 }
 0x4fb   :  { %1896 = vrcp.f32 %v707_v63 }
 0x508   :  { %v1897_v34 = vpop.eup %1896 }
 0x568   :  { %v720_v15 = vpop.permute.xlu0 %719 }
 0x569   :  { %v725_v3 = vadd.f32 %v720_v15, %v713_v46 }
 0x56b   :  { %1898 = vtanh.f32 %v725_v3 }
 0x56c   :  { %v722_v17 = vpop.permute.xlu1 %721  ;;  %1900 = vrcp.f32 %v708_v32 }
 0x56d   :  { %v726_v52 = vadd.f32 %v722_v17, %v714_v28  ;;  %v2884_v28 = vsel %vm2254_vm1, %v2243_v50, %v2259_v62 }
 0x56f   :  { %1902 = vtanh.f32 %v726_v52 }
 0x578   :  { %v1899_v49 = vpop.eup %1898 }
 0x579   :  { %v1901_v31 = vpop.eup %1900  ;;  %v2538_v24 = vmul.f32 %v1899_v49, %v1897_v34 }
 0x57c   :  { %v1903_v22 = vpop.eup %1902 }
 0x57d   :  { %v2540_v27 = vmul.f32 %v1903_v22, %v1901_v31  ;;  %v2887_v22 = vsel %vm2261_vm2, %v2252_v59, %v2288_v18 }
 0x57f   :  { %2883 = vst [vmem:[#allocation9_spill] sm:$0xff] %v2540_v27  ;;  %v759_v4 = vpack.c.bf16 %v2540_v27, %v2538_v24 }
 0x581   :  { %761 = vrot.lane.b32.xlu0 %v759_v4, %s2025_s2 }
 0x5f3   :  { %v762_v19 = vpop.permute.xlu0 %761 }
 0x5f4   :  { %1692 = vmatmul.mubr.msk.bf16.vlgmr.msra.gmra.mxu1 %vm384_vm3, %v762_v19 }
 0x5f5   :  { %1021 = vmatpush1.bf16.msra.mxu1 %v2097_v6  ;;  %1044 = vmatprep.mubr.bf16.mxu1 %v2878_v1 }
 0x5f6   :  { %1022 = vmatprep.subr.bf16.mxu1 %v2106_v8 }
 0x5f9   :  { %1023 = vmatpush1.bf16.msra.mxu1 %v2115_v9 }
 0x5fa   :  { %1024 = vmatprep.subr.bf16.mxu1 %v2122_v10 }
 0x5fd   :  { %1025 = vmatpush1.bf16.msra.mxu1 %v2133_v12 }
 0x5fe   :  { %1026 = vmatprep.subr.bf16.mxu1 %v2139_v13 }
 0x601   :  { %1027 = vmatpush1.bf16.msra.mxu1 %v2148_v14 }
 0x602   :  { %1264 = vmatprep.subr.bf16.mxu1 %v2092_v5  ;;  %v2886_v5 = vsel %vm2261_vm2, %v2246_v53, %v2266_v2 }
 0x6b4   :  { %v800_v32 = vpop.f32.mrf.mxu1 }
 0x6b5   :  { %v809_v15 = vadd.f32 %v800_v32, %v2884_v28 }
 0x6b6   :  { %v802_v40 = vpop.f32.mrf.mxu1 }
 0x6b7   :  { %v1693_v58 = vmul.f32 -1.442695, %v809_v15  ;;  %v810_v17 = vadd.f32 %v802_v40, %v2886_v5 }
 0x6b8   :  { %v804_v30 = vpop.f32.mrf.mxu1 }
 0x6b9   :  { %1904 = vpow2.f32 %v1693_v58  ;;  %v811_v46 = vadd.f32 %v804_v30, %v2885_v38 }
 0x6ba   :  { %v806_v34 = vpop.f32.mrf.mxu1 }
 0x6bb   :  { %v1694_v63 = vmul.f32 -1.442695, %v811_v46  ;;  %v812_v4 = vadd.f32 %v806_v34, %v2887_v22  ;;  %v1695_v46 = vmul.f32 -1.442695, %v810_v17 }
 0x6bd   :  { %1906 = vpow2.f32 %v1694_v63  ;;  %v1696_v63 = vmul.f32 -1.442695, %v812_v4 }
 0x6be   :  { %1908 = vtanh.f32 %v810_v17 }
 0x6c6   :  { %v1905_v49 = vpop.eup %1904 }
 0x6c7   :  { %v819_v31 = vadd.f32 1.0, %v1905_v49 }
 0x6c9   :  { %1910 = vrcp.f32 %v819_v31 }
 0x6ca   :  { %v1907_v19 = vpop.eup %1906  ;;  %1912 = vtanh.f32 %v812_v4 }
 0x6cb   :  { %v820_v32 = vadd.f32 1.0, %v1907_v19  ;;  %v1909_v28 = vpop.eup %1908 }
 0x6cd   :  { %1914 = vrcp.f32 %v820_v32 }
 0x6ce   :  { %1916 = vpow2.f32 %v1695_v46 }
 0x6cf   :  { %1918 = vpow2.f32 %v1696_v63 }
 0x6d6   :  { %v1911_v15 = vpop.eup %1910 }
 0x6d7   :  { %v841_v58 = vmul.f32 %v1911_v15, %v1909_v28  ;;  %v1913_v30 = vpop.eup %1912  ;;  %v839_v49 = vmul.f32 %v1911_v15, %v725_v3  ;;  %v2888_v15 = vsel %vm2254_vm1, %v2259_v62, %v2243_v50 }
 0x6d9   :  { %845 = vrot.lane.b32.xlu1 %v841_v58, %s2025_s2 }
 0x6da   :  { %v1915_v40 = vpop.eup %1914 }
 0x6db   :  { %v842_v38 = vmul.f32 %v1915_v40, %v1913_v30  ;;  %v1917_v5 = vpop.eup %1916  ;;  %v840_v27 = vmul.f32 %v1915_v40, %v726_v52 }
 0x6dc   :  { %v1919_v34 = vpop.eup %1918  ;;  %v833_v31 = vadd.f32 1.0, %v1917_v5 }
 0x6dd   :  { %847 = vrot.lane.b32.xlu0 %v842_v38, %s2025_s2  ;;  %v834_v32 = vadd.f32 1.0, %v1919_v34 }
 0x6de   :  { %1920 = vrcp.f32 %v833_v31  ;;  %v2889_v31 = vsel %vm2254_vm1, %v2277_v11, %v2249_v56 }
 0x6eb   :  { %v1921_v30 = vpop.eup %1920 }
 0x74b   :  { %v846_v22 = vpop.permute.xlu1 %845 }
 0x74c   :  { %v851_v19 = vadd.f32 %v846_v22, %v839_v49 }
 0x74e   :  { %1922 = vtanh.f32 %v851_v19 }
 0x74f   :  { %v848_v28 = vpop.permute.xlu0 %847  ;;  %1924 = vrcp.f32 %v834_v32 }
 0x750   :  { %v852_v58 = vadd.f32 %v848_v28, %v840_v27  ;;  %v2890_v28 = vsel %vm2261_vm2, %v2266_v2, %v2246_v53 }
 0x752   :  { %1926 = vtanh.f32 %v852_v58 }
 0x75b   :  { %v1923_v38 = vpop.eup %1922 }
 0x75c   :  { %v1925_v17 = vpop.eup %1924  ;;  %v2577_v46 = vmul.f32 %v1923_v38, %v1921_v30 }
 0x75f   :  { %v1927_v4 = vpop.eup %1926 }
 0x760   :  { %v2579_v63 = vmul.f32 %v1927_v4, %v1925_v17  ;;  %v2891_v17 = vsel %vm2261_vm2, %v2288_v18, %v2252_v59 }
 0x762   :  { %v883_v3 = vpack.c.bf16 %v2579_v63, %v2577_v46 }
 0x764   :  { %885 = vrot.lane.b32.xlu1 %v883_v3, %s2025_s2 }
 0x7d6   :  { %v886_v52 = vpop.permute.xlu1 %885 }
 0x7d7   :  { %1697 = vmatmul.mubr.msk.bf16.vlgmr.msra.gmra.mxu0 %vm384_vm3, %v886_v52 }
 0x7d8   :  { %1143 = vmatpush1.bf16.msra.mxu0 %v2097_v6  ;;  %1166 = vmatprep.mubr.bf16.mxu0 %v2878_v1 }
 0x7d9   :  { %1144 = vmatprep.subr.bf16.mxu0 %v2106_v8 }
 0x7dc   :  { %1145 = vmatpush1.bf16.msra.mxu0 %v2115_v9 }
 0x7dd   :  { %1146 = vmatprep.subr.bf16.mxu0 %v2122_v10 }
 0x7e0   :  { %1147 = vmatpush1.bf16.msra.mxu0 %v2133_v12 }
 0x7e1   :  { %1148 = vmatprep.subr.bf16.mxu0 %v2139_v13 }
 0x7e4   :  { %1149 = vmatpush1.bf16.msra.mxu0 %v2148_v14 }
 0x897   :  { %v924_v27 = vpop.f32.mrf.mxu0 }
 0x898   :  { %v933_v40 = vadd.f32 %v924_v27, %v2888_v15 }
 0x899   :  { %v926_v5 = vpop.f32.mrf.mxu0 }
 0x89a   :  { %v1698_v34 = vmul.f32 -1.442695, %v933_v40  ;;  %v934_v30 = vadd.f32 %v926_v5, %v2890_v28 }
 0x89b   :  { %v928_v49 = vpop.f32.mrf.mxu0 }
 0x89c   :  { %1928 = vpow2.f32 %v1698_v34  ;;  %v935_v22 = vadd.f32 %v928_v49, %v2889_v31  ;;  %v1700_v40 = vmul.f32 -1.442695, %v934_v30 }
 0x89d   :  { %v930_v50 = vpop.f32.mrf.mxu0 }
 0x89e   :  { %v1699_v32 = vmul.f32 -1.442695, %v935_v22  ;;  %v936_v4 = vadd.f32 %v930_v50, %v2891_v17 }
 0x8a0   :  { %1930 = vpow2.f32 %v1699_v32  ;;  %v1701_v5 = vmul.f32 -1.442695, %v936_v4 }
 0x8a1   :  { %1932 = vtanh.f32 %v934_v30 }
 0x8a9   :  { %v1929_v62 = vpop.eup %1928 }
 0x8aa   :  { %v943_v38 = vadd.f32 1.0, %v1929_v62 }
 0x8ac   :  { %1934 = vrcp.f32 %v943_v38 }
 0x8ad   :  { %v1931_v56 = vpop.eup %1930  ;;  %1936 = vtanh.f32 %v936_v4 }
 0x8ae   :  { %v944_v11 = vadd.f32 1.0, %v1931_v56  ;;  %v1933_v3 = vpop.eup %1932 }
 0x8b0   :  { %1938 = vrcp.f32 %v944_v11 }
 0x8b1   :  { %1940 = vpow2.f32 %v1700_v40 }
 0x8b2   :  { %1942 = vpow2.f32 %v1701_v5 }
 0x8b9   :  { %v1935_v52 = vpop.eup %1934 }
 0x8ba   :  { %v965_v27 = vmul.f32 %v1935_v52, %v1933_v3  ;;  %v1937_v53 = vpop.eup %1936  ;;  %v963_v34 = vmul.f32 %v1935_v52, %v851_v19 }
 0x8bc   :  { %969 = vrot.lane.b32.xlu0 %v965_v27, %s2025_s2 }
 0x8bd   :  { %v1939_v2 = vpop.eup %1938 }
 0x8be   :  { %v966_v15 = vmul.f32 %v1939_v2, %v1937_v53  ;;  %v1941_v59 = vpop.eup %1940  ;;  %v964_v28 = vmul.f32 %v1939_v2, %v852_v58  ;;  %v2895_v2 = vsel %vm2261_vm2, %v2332_v51, %v2240_v48 }
 0x8bf   :  { %v1943_v18 = vpop.eup %1942  ;;  %v957_v49 = vadd.f32 1.0, %v1941_v59 }
 0x8c0   :  { %971 = vrot.lane.b32.xlu1 %v966_v15, %s2025_s2  ;;  %v958_v32 = vadd.f32 1.0, %v1943_v18 }
 0x8c1   :  { %1944 = vrcp.f32 %v957_v49 }
 0x8ce   :  { %v1945_v38 = vpop.eup %1944 }
 0x92e   :  { %v970_v31 = vpop.permute.xlu0 %969 }
 0x92f   :  { %v975_v22 = vadd.f32 %v970_v31, %v963_v34 }
 0x931   :  { %1946 = vtanh.f32 %v975_v22 }
 0x932   :  { %v972_v50 = vpop.permute.xlu1 %971  ;;  %1948 = vrcp.f32 %v958_v32 }
 0x933   :  { %v976_v62 = vadd.f32 %v972_v50, %v964_v28 }
 0x935   :  { %1950 = vtanh.f32 %v976_v62 }
 0x93e   :  { %v1947_v17 = vpop.eup %1946 }
 0x93f   :  { %v1949_v30 = vpop.eup %1948  ;;  %v2615_v56 = vmul.f32 %v1947_v17, %v1945_v38 }
 0x942   :  { %v1951_v4 = vpop.eup %1950 }
 0x943   :  { %v2617_v11 = vmul.f32 %v1951_v4, %v1949_v30 }
 0x945   :  { %v1005_v19 = vpack.c.bf16 %v2617_v11, %v2615_v56 }
 0x947   :  { %1007 = vrot.lane.b32.xlu0 %v1005_v19, %s2025_s2 }
 0x9b9   :  { %v1008_v58 = vpop.permute.xlu0 %1007 }
 0x9ba   :  { %1702 = vmatmul.mubr.msk.bf16.vlgmr.msra.gmra.mxu1 %vm384_vm3, %v1008_v58 }
 0x9bb   :  { %1265 = vmatpush1.bf16.msra.mxu1 %v2097_v6  ;;  %1288 = vmatprep.mubr.bf16.mxu1 %v2878_v1  ;;  %v2892_v6 = vsel %vm2254_vm1, %v2299_v26, %v2231_v41 }
 0x9bc   :  { %1266 = vmatprep.subr.bf16.mxu1 %v2106_v8 }
 0x9bf   :  { %1267 = vmatpush1.bf16.msra.mxu1 %v2115_v9  ;;  %v2893_v9 = vsel %vm2254_vm1, %v2321_v44, %v2237_v45 }
 0x9c0   :  { %1268 = vmatprep.subr.bf16.mxu1 %v2122_v10 }
 0x9c3   :  { %1269 = vmatpush1.bf16.msra.mxu1 %v2133_v12 }
 0x9c4   :  { %1270 = vmatprep.subr.bf16.mxu1 %v2139_v13  ;;  %v2894_v13 = vsel %vm2261_vm2, %v2310_v36, %v2234_v43 }
 0x9c7   :  { %1271 = vmatpush1.bf16.msra.mxu1 %v2148_v14 }
 0xa7a   :  { %v1046_v3 = vpop.f32.mrf.mxu1 }
 0xa7b   :  { %v1055_v52 = vadd.f32 %v1046_v3, %v2892_v6 }
 0xa7c   :  { %v1048_v1 = vpop.f32.mrf.mxu1 }
 0xa7d   :  { %v1703_v27 = vmul.f32 -1.442695, %v1055_v52  ;;  %v1056_v14 = vadd.f32 %v1048_v1, %v2894_v13 }
 0xa7e   :  { %v1050_v8 = vpop.f32.mrf.mxu1 }
 0xa7f   :  { %1952 = vpow2.f32 %v1703_v27  ;;  %v1057_v10 = vadd.f32 %v1050_v8, %v2893_v9  ;;  %v1705_v34 = vmul.f32 -1.442695, %v1056_v14  ;;  %v2896_v8 = vsel %vm2254_vm1, %v2343_v57, %v2219_v33 }
 0xa80   :  { %v1052_v41 = vpop.f32.mrf.mxu1 }
 0xa81   :  { %v1704_v12 = vmul.f32 -1.442695, %v1057_v10  ;;  %v1058_v15 = vadd.f32 %v1052_v41, %v2895_v2 }
 0xa83   :  { %1954 = vpow2.f32 %v1704_v12  ;;  %v1706_v49 = vmul.f32 -1.442695, %v1058_v15 }
 0xa84   :  { %1956 = vtanh.f32 %v1056_v14  ;;  %v2897_v14 = vsel %vm2254_vm1, %v2365_v42, %v2225_v37 }
 0xa8c   :  { %v1953_v26 = vpop.eup %1952 }
 0xa8d   :  { %v1065_v53 = vadd.f32 1.0, %v1953_v26 }
 0xa8f   :  { %1958 = vrcp.f32 %v1065_v53  ;;  %v2898_v53 = vsel %vm2261_vm2, %v2354_v7, %v2222_v35 }
 0xa90   :  { %v1955_v45 = vpop.eup %1954  ;;  %1960 = vtanh.f32 %v1058_v15 }
 0xa91   :  { %v1066_v44 = vadd.f32 1.0, %v1955_v45  ;;  %v1957_v40 = vpop.eup %1956  ;;  %v2899_v45 = vsel %vm2261_vm2, %v2376_v25, %v2228_v39 }
 0xa93   :  { %1962 = vrcp.f32 %v1066_v44 }
 0xa94   :  { %1964 = vpow2.f32 %v1705_v34 }
 0xa95   :  { %1966 = vpow2.f32 %v1706_v49 }
 0xa9c   :  { %v1959_v5 = vpop.eup %1958 }
 0xa9d   :  { %v1087_v59 = vmul.f32 %v1959_v5, %v1957_v40  ;;  %v1961_v43 = vpop.eup %1960  ;;  %v1085_v31 = vmul.f32 %v1959_v5, %v975_v22 }
 0xa9f   :  { %1091 = vrot.lane.b32.xlu1 %v1087_v59, %s2025_s2 }
 0xaa0   :  { %v1963_v36 = vpop.eup %1962 }
 0xaa1   :  { %v1088_v18 = vmul.f32 %v1963_v36, %v1961_v43  ;;  %v1965_v48 = vpop.eup %1964  ;;  %v1086_v17 = vmul.f32 %v1963_v36, %v976_v62 }
 0xaa2   :  { %v1967_v51 = vpop.eup %1966  ;;  %v1079_v32 = vadd.f32 1.0, %v1965_v48 }
 0xaa3   :  { %1093 = vrot.lane.b32.xlu0 %v1088_v18, %s2025_s2  ;;  %v1080_v38 = vadd.f32 1.0, %v1967_v51 }
 0xaa4   :  { %1968 = vrcp.f32 %v1079_v32 }
 0xab1   :  { %v1969_v19 = vpop.eup %1968 }
 0xb11   :  { %v1092_v28 = vpop.permute.xlu1 %1091 }
 0xb12   :  { %v1097_v50 = vadd.f32 %v1092_v28, %v1085_v31 }
 0xb14   :  { %1970 = vtanh.f32 %v1097_v50 }
 0xb15   :  { %v1094_v30 = vpop.permute.xlu0 %1093  ;;  %1972 = vrcp.f32 %v1080_v38 }
 0xb16   :  { %v1098_v4 = vadd.f32 %v1094_v30, %v1086_v17 }
 0xb18   :  { %1974 = vtanh.f32 %v1098_v4 }
 0xb21   :  { %v1971_v58 = vpop.eup %1970 }
 0xb22   :  { %v1973_v3 = vpop.eup %1972  ;;  %v2653_v52 = vmul.f32 %v1971_v58, %v1969_v19 }
 0xb25   :  { %v1975_v6 = vpop.eup %1974 }
 0xb26   :  { %v2655_v1 = vmul.f32 %v1975_v6, %v1973_v3 }
 0xb28   :  { %v1127_v22 = vpack.c.bf16 %v2655_v1, %v2653_v52 }
 0xb2a   :  { %1129 = vrot.lane.b32.xlu1 %v1127_v22, %s2025_s2 }
 0xb9c   :  { %v1130_v62 = vpop.permute.xlu1 %1129 }
 0xb9d   :  { %1707 = vmatmul.mubr.msk.bf16.vlgmr.msra.gmra.mxu0 %vm384_vm3, %v1130_v62  ;;  %v2900_v62 = vsel %vm2254_vm1, %v2391_v55, %v2388_v47 }
 0xc5d   :  { %v1168_v27 = vpop.f32.mrf.mxu0 }
 0xc5e   :  { %v1177_v9 = vadd.f32 %v1168_v27, %v2896_v8 }
 0xc5f   :  { %v1170_v10 = vpop.f32.mrf.mxu0 }
 0xc60   :  { %v1708_v12 = vmul.f32 -1.442695, %v1177_v9  ;;  %v1178_v2 = vadd.f32 %v1170_v10, %v2898_v53 }
 0xc61   :  { %v1172_v13 = vpop.f32.mrf.mxu0 }
 0xc62   :  { %1976 = vpow2.f32 %v1708_v12  ;;  %v1179_v41 = vadd.f32 %v1172_v13, %v2897_v14  ;;  %v1710_v36 = vmul.f32 -1.442695, %v1178_v2  ;;  %v2901_v12 = vsel %vm2254_vm1, %v2417_v54, %v2414_v16 }
 0xc63   :  { %v1174_v33 = vpop.f32.mrf.mxu0 }
 0xc64   :  { %v1709_v26 = vmul.f32 -1.442695, %v1179_v41  ;;  %v1180_v44 = vadd.f32 %v1174_v33, %v2899_v45  ;;  %v2902_v41 = vsel %vm2261_vm2, %v2406_v23, %v2403_v21 }
 0xc66   :  { %1978 = vpow2.f32 %v1709_v26  ;;  %v1711_v18 = vmul.f32 -1.442695, %v1180_v44 }
 0xc67   :  { %1980 = vtanh.f32 %v1178_v2 }
 0xc6f   :  { %v1977_v57 = vpop.eup %1976 }
 0xc70   :  { %v1187_v15 = vadd.f32 1.0, %v1977_v57 }
 0xc72   :  { %1982 = vrcp.f32 %v1187_v15 }
 0xc73   :  { %v1979_v37 = vpop.eup %1978  ;;  %1984 = vtanh.f32 %v1180_v44  ;;  %v1828_v44 = vld [vmem:[%s2855_s4 + $0x18] sm:$0xff]  }
 0xc74   :  { %v1188_v42 = vadd.f32 1.0, %v1979_v37  ;;  %v1981_v40 = vpop.eup %1980  ;;  %1752 = vmatprep.subr.bf16.mxu0 %v1828_v44 }
 0xc75   :  { %1753 = vmatpush3.bf16.msra.mxu0 %v1828_v44 }
 0xc76   :  { %1986 = vrcp.f32 %v1188_v42 }
 0xc77   :  { %1988 = vpow2.f32 %v1710_v36 }
 0xc78   :  { %1990 = vpow2.f32 %v1711_v18 }
 0xc7f   :  { %v1983_v5 = vpop.eup %1982 }
 0xc80   :  { %v1209_v59 = vmul.f32 %v1983_v5, %v1981_v40  ;;  %v1985_v35 = vpop.eup %1984  ;;  %v1207_v34 = vmul.f32 %v1983_v5, %v1097_v50 }
 0xc82   :  { %1213 = vrot.lane.b32.xlu0 %v1209_v59, %s2025_s2 }
 0xc83   :  { %v1987_v7 = vpop.eup %1986 }
 0xc84   :  { %v1210_v43 = vmul.f32 %v1987_v7, %v1985_v35  ;;  %v1989_v25 = vpop.eup %1988  ;;  %v1208_v32 = vmul.f32 %v1987_v7, %v1098_v4 }
 0xc85   :  { %v1991_v39 = vpop.eup %1990  ;;  %v1201_v49 = vadd.f32 1.0, %v1989_v25 }
 0xc86   :  { %1215 = vrot.lane.b32.xlu1 %v1210_v43, %s2025_s2  ;;  %v1202_v31 = vadd.f32 1.0, %v1991_v39 }
 0xc87   :  { %1992 = vrcp.f32 %v1201_v49 }
 0xc94   :  { %v1993_v17 = vpop.eup %1992 }
 0xcf4   :  { %v1214_v48 = vpop.permute.xlu0 %1213 }
 0xcf5   :  { %v2683_v51 = vadd.f32 %v1214_v48, %v1207_v34  ;;  %v1829_v34 = vld [vmem:[%s2855_s4 + $0x10] sm:$0xff]  }
 0xcf6   :  { %1754 = vmatprep.subr.bf16.mxu0 %v1829_v34 }
 0xcf7   :  { %1994 = vtanh.f32 %v2683_v51  ;;  %1755 = vmatpush3.bf16.msra.mxu0 %v1829_v34 }
 0xcf8   :  { %v1216_v28 = vpop.permute.xlu1 %1215  ;;  %1996 = vrcp.f32 %v1202_v31 }
 0xcf9   :  { %v2686_v38 = vadd.f32 %v1216_v28, %v1208_v32  ;;  %v1831_v28 = vld [vmem:[%s2855_s4] sm:$0xff]  }
 0xcfb   :  { %1998 = vtanh.f32 %v2686_v38 }
 0xd04   :  { %v1995_v30 = vpop.eup %1994 }
 0xd05   :  { %v1997_v19 = vpop.eup %1996  ;;  %v1223_v50 = vmul.f32 %v1995_v30, %v1993_v17 }
 0xd08   :  { %v1999_v58 = vpop.eup %1998 }
 0xd09   :  { %v1224_v3 = vmul.f32 %v1999_v58, %v1997_v19 }
 0xd0b   :  { %v1249_v6 = vpack.c.bf16 %v1224_v3, %v1223_v50 }
 0xd0d   :  { %1251 = vrot.lane.b32.xlu0 %v1249_v6, %s2025_s2 }
 0xd7f   :  { %v1252_v22 = vpop.permute.xlu0 %1251 }
 0xd80   :  { %1712 = vmatmul.mubr.msk.bf16.vlgmr.msra.gmra.mxu1 %vm384_vm3, %v1252_v22 }
 0xe40   :  { %v1290_v4 = vpop.f32.mrf.mxu1 }
 0xe41   :  { %v1299_v27 = vadd.f32 %v1290_v4, %v2900_v62 }
 0xe42   :  { %v1292_v8 = vpop.f32.mrf.mxu1 }
 0xe43   :  { %v1713_v9 = vmul.f32 -1.442695, %v1299_v27  ;;  %v1300_v26 = vadd.f32 %v1292_v8, %v2902_v41 }
 0xe44   :  { %v1294_v10 = vpop.f32.mrf.mxu1 }
 0xe45   :  { %2000 = vpow2.f32 %v1713_v9  ;;  %v1301_v13 = vadd.f32 %v1294_v10, %v2901_v12  ;;  %v1715_v37 = vmul.f32 -1.442695, %v1300_v26 }
 0xe46   :  { %v1296_v47 = vpop.f32.mrf.mxu1 }
 0xe47   :  { %v1714_v14 = vmul.f32 -1.442695, %v1301_v13  ;;  %v1302_v2 = vadd.f32 %v1296_v47, %v2903_v61 }
 0xe49   :  { %2002 = vpow2.f32 %v1714_v14  ;;  %v1716_v42 = vmul.f32 -1.442695, %v1302_v2 }
 0xe4a   :  { %2004 = vtanh.f32 %v1300_v26 }
 0xe52   :  { %v2001_v55 = vpop.eup %2000 }
 0xe53   :  { %v1309_v53 = vadd.f32 1.0, %v2001_v55 }
 0xe55   :  { %2006 = vrcp.f32 %v1309_v53 }
 0xe56   :  { %v2003_v16 = vpop.eup %2002  ;;  %2008 = vtanh.f32 %v1302_v2 }
 0xe57   :  { %v1310_v54 = vadd.f32 1.0, %v2003_v16  ;;  %v2005_v33 = vpop.eup %2004 }
 0xe59   :  { %2010 = vrcp.f32 %v1310_v54 }
 0xe5a   :  { %2012 = vpow2.f32 %v1715_v37 }
 0xe5b   :  { %2014 = vpow2.f32 %v1716_v42  ;;  %v2803_v42 = vld [vmem:[%s2857_s5] ss:$0 sm:$0xff] }
 0xe62   :  { %v2007_v57 = vpop.eup %2006 }
 0xe63   :  { %v1331_v15 = vmul.f32 %v2007_v57, %v2005_v33  ;;  %v2009_v21 = vpop.eup %2008 }
 0xe65   :  { %1335 = vrot.lane.b32.xlu1 %v1331_v15, %s2025_s2 }
 0xe66   :  { %v2011_v23 = vpop.eup %2010 }
 0xe67   :  { %v1332_v45 = vmul.f32 %v2011_v23, %v2009_v21  ;;  %v2013_v40 = vpop.eup %2012  ;;  %v1330_v36 = vmul.f32 %v2011_v23, %v2686_v38 }
 0xe68   :  { %v1323_v5 = vadd.f32 1.0, %v2013_v40  ;;  %v2015_v59 = vpop.eup %2014 }
 0xe69   :  { %481 = vrot.lane.b32.xlu1 %v2459_v29, %s2025_s2  ;;  %1337 = vrot.lane.b32.xlu0 %v1332_v45, %s2025_s2  ;;  %v2907_v29 = vld [vmem:[#allocation9_spill] sm:$0xff]  ;;  %v1324_v43 = vadd.f32 1.0, %v2015_v59 }
 0xe6a   :  { %2016 = vrcp.f32 %v1323_v5 }
 0xe6d   :  { %607 = vrot.lane.b32.xlu1 %v2904_v0, %s2025_s2  ;;  %483 = vrot.lane.b32.xlu0 %v2905_v20, %s2025_s2 }
 0xe71   :  { %1227 = vrot.lane.b32.xlu1 %v1223_v50, %s2025_s2  ;;  %609 = vrot.lane.b32.xlu0 %v2906_v60, %s2025_s2  ;;  %v2026_v60 = vmov 0.0  }
 0xe72   :  { %1776 = vmatprep.subr.bf16.mxu1 %v2026_v60  ;;  %1792 = vmatprep.mubr.msk.bf16.mxu1 %vm2027_vm5, %v2026_v60 }
 0xe75   :  { %733 = vrot.lane.b32.xlu1 %v2538_v24, %s2025_s2  ;;  %1229 = vrot.lane.b32.xlu0 %v1224_v3, %s2025_s2  ;;  %v1329_v24 = vmul.f32 %v2007_v57, %v2683_v51  ;;  %v1830_v51 = vld [vmem:[%s2855_s4 + $0x8] sm:$0xff]  }
 0xe76   :  { %1756 = vmatprep.subr.bf16.mxu0 %v1830_v51 }
 0xe77   :  { %1757 = vmatpush3.bf16.msra.mxu0 %v1830_v51  ;;  %v2017_v38 = vpop.eup %2016 }
 0xe78   :  { %1758 = vmatprep.subr.bf16.mxu0 %v1831_v28 }
 0xe79   :  { %735 = vrot.lane.b32.xlu0 %v2907_v29, %s2025_s2  ;;  %v13_v29 = vstv %s2856_s7 }
 0xe7a   :  { %14 = vst [vmem:[#allocation4] sm:$0x1] %v13_v29 }
 0xe7b   :  { %1759 = vmatpush3.bf16.msra.mxu0 %v1831_v28 }
 0xe81   :  { %v1568_v44 = vld [vmem:[#allocation4] sm:$0x1] }
 0xed7   :  { %v1336_v35 = vpop.permute.xlu1 %1335 }
 0xed8   :  { %v1341_v7 = vadd.f32 %v1336_v35, %v1329_v24 }
 0xeda   :  { %2018 = vtanh.f32 %v1341_v7 }
 0xedb   :  { %v482_v18 = vpop.permute.xlu1 %481  ;;  %v1338_v25 = vpop.permute.xlu0 %1337  ;;  %2020 = vrcp.f32 %v1324_v43 }
 0xedc   :  { %487 = vst.msk [vmem:[#allocation3] sm:$0xff] %vm124_vm0, %v482_v18  ;;  %v1342_v39 = vadd.f32 %v1338_v25, %v1330_v36 }
 0xedd   :  { %491 = vst.msk [vmem:[#allocation3 + $0x70] sm:$0xff] %vm490_vm4, %v482_v18 }
 0xede   :  { %2022 = vtanh.f32 %v1342_v39 }
 0xedf   :  { %v608_v49 = vpop.permute.xlu1 %607  ;;  %v484_v48 = vpop.permute.xlu0 %483 }
 0xee0   :  { %614 = vst.msk [vmem:[#allocation3 + $0x10] sm:$0xff] %vm124_vm0, %v608_v49  ;;  %488 = vst.msk [vmem:[#allocation3 + $0x8] sm:$0xff] %vm124_vm0, %v484_v48 }
 0xee1   :  { %617 = vst.msk [vmem:[#allocation3 + $0x60] sm:$0xff] %vm490_vm4, %v608_v49  ;;  %492 = vst.msk [vmem:[#allocation3 + $0x78] sm:$0xff] %vm490_vm4, %v484_v48 }
 0xee3   :  { %v1228_v31 = vpop.permute.xlu1 %1227  ;;  %v610_v32 = vpop.permute.xlu0 %609 }
 0xee4   :  { %1233 = vst.msk [vmem:[#allocation3 + $0x60] sm:$0xff] %vm124_vm0, %v1228_v31  ;;  %615 = vst.msk [vmem:[#allocation3 + $0x18] sm:$0xff] %vm124_vm0, %v610_v32 }
 0xee5   :  { %1235 = vst.msk [vmem:[#allocation3 + $0x10] sm:$0xff] %vm490_vm4, %v1228_v31  ;;  %618 = vst.msk [vmem:[#allocation3 + $0x68] sm:$0xff] %vm490_vm4, %v610_v32 }
 0xee7   :  { %v2019_v17 = vpop.eup %2018  ;;  %v734_v30 = vpop.permute.xlu1 %733 }
 0xee8   :  { %v1230_v19 = vpop.permute.xlu0 %1229  ;;  %740 = vst.msk [vmem:[#allocation3 + $0x20] sm:$0xff] %vm124_vm0, %v734_v30  ;;  %v1345_v58 = vmul.f32 %v2019_v17, %v2017_v38  ;;  %v2021_v50 = vpop.eup %2020 }
 0xee9   :  { %743 = vst.msk [vmem:[#allocation3 + $0x50] sm:$0xff] %vm490_vm4, %v734_v30  ;;  %1236 = vst.msk [vmem:[#allocation3 + $0x18] sm:$0xff] %vm490_vm4, %v1230_v19 }
 0xeea   :  { %1234 = vst.msk [vmem:[#allocation3 + $0x68] sm:$0xff] %vm124_vm0, %v1230_v19  ;;  %1349 = vrot.lane.b32.xlu1 %v1345_v58, %s2025_s2 }
 0xeeb   :  { %v2023_v3 = vpop.eup %2022  ;;  %v1371_v21 = vld [vmem:[#allocation3 + $0x60] sm:$0xff] }
 0xeec   :  { %v736_v6 = vpop.permute.xlu0 %735  ;;  %v1346_v22 = vmul.f32 %v2023_v3, %v2021_v50  ;;  %v1361_v10 = vld [vmem:[#allocation3 + $0x10] sm:$0xff] }
 0xeed   :  { %741 = vst.msk [vmem:[#allocation3 + $0x28] sm:$0xff] %vm124_vm0, %v736_v6 }
 0xeee   :  { %744 = vst.msk [vmem:[#allocation3 + $0x58] sm:$0xff] %vm490_vm4, %v736_v6  ;;  %859 = vrot.lane.b32.xlu1 %v2577_v46, %s2025_s2  ;;  %1351 = vrot.lane.b32.xlu0 %v1346_v22, %s2025_s2 }
 0xef1   :  { %v1372_v33 = vld [vmem:[#allocation3 + $0x68] sm:$0xff] }
 0xef2   :  { %1105 = vrot.lane.b32.xlu1 %v2653_v52, %s2025_s2  ;;  %861 = vrot.lane.b32.xlu0 %v2579_v63, %s2025_s2  ;;  %v1381_v23 = vpack.c.bf16 %v1372_v33, %v1371_v21 }
 0xef6   :  { %983 = vrot.lane.b32.xlu1 %v2615_v56, %s2025_s2  ;;  %1107 = vrot.lane.b32.xlu0 %v2655_v1, %s2025_s2 }
 0xefa   :  { %985 = vrot.lane.b32.xlu0 %v2617_v11, %s2025_s2  ;;  %v1362_v11 = vld [vmem:[#allocation3 + $0x18] sm:$0xff]  ;;  %1571 = vperm.xlu1 %1800, %v1568_v44  }
 0xefb   :  { %v1376_v12 = vpack.c.bf16 %v1362_v11, %v1361_v10 }
 0xf5c   :  { %v1350_v4 = vpop.permute.xlu1 %1349 }
 0xf5d   :  { %1355 = vst.msk [vmem:[#allocation3 + $0x70] sm:$0xff] %vm124_vm0, %v1350_v4 }
 0xf5e   :  { %1357 = vst.msk [vmem:[#allocation3] sm:$0xff] %vm490_vm4, %v1350_v4 }
 0xf60   :  { %v860_v46 = vpop.permute.xlu1 %859  ;;  %v1352_v62 = vpop.permute.xlu0 %1351 }
 0xf61   :  { %866 = vst.msk [vmem:[#allocation3 + $0x30] sm:$0xff] %vm124_vm0, %v860_v46  ;;  %1356 = vst.msk [vmem:[#allocation3 + $0x78] sm:$0xff] %vm124_vm0, %v1352_v62 }
 0xf62   :  { %869 = vst.msk [vmem:[#allocation3 + $0x40] sm:$0xff] %vm490_vm4, %v860_v46  ;;  %1358 = vst.msk [vmem:[#allocation3 + $0x8] sm:$0xff] %vm490_vm4, %v1352_v62 }
 0xf64   :  { %v1106_v63 = vpop.permute.xlu1 %1105  ;;  %v862_v56 = vpop.permute.xlu0 %861  ;;  %v1373_v0 = vld [vmem:[#allocation3 + $0x70] sm:$0xff] }
 0xf65   :  { %1111 = vst.msk [vmem:[#allocation3 + $0x50] sm:$0xff] %vm124_vm0, %v1106_v63  ;;  %867 = vst.msk [vmem:[#allocation3 + $0x38] sm:$0xff] %vm124_vm0, %v862_v56  ;;  %v1359_v27 = vld [vmem:[#allocation3] sm:$0xff] }
 0xf66   :  { %1113 = vst.msk [vmem:[#allocation3 + $0x20] sm:$0xff] %vm490_vm4, %v1106_v63  ;;  %870 = vst.msk [vmem:[#allocation3 + $0x48] sm:$0xff] %vm490_vm4, %v862_v56 }
 0xf68   :  { %v984_v52 = vpop.permute.xlu1 %983  ;;  %v1108_v1 = vpop.permute.xlu0 %1107  ;;  %v1374_v45 = vld [vmem:[#allocation3 + $0x78] sm:$0xff] }
 0xf69   :  { %v1360_v8 = vld [vmem:[#allocation3 + $0x8] sm:$0xff]  ;;  %989 = vst.msk [vmem:[#allocation3 + $0x40] sm:$0xff] %vm124_vm0, %v984_v52  ;;  %1112 = vst.msk [vmem:[#allocation3 + $0x58] sm:$0xff] %vm124_vm0, %v1108_v1  ;;  %v1382_v20 = vpack.c.bf16 %v1374_v45, %v1373_v0 }
 0xf6a   :  { %991 = vst.msk [vmem:[#allocation3 + $0x30] sm:$0xff] %vm490_vm4, %v984_v52  ;;  %1114 = vst.msk [vmem:[#allocation3 + $0x28] sm:$0xff] %vm490_vm4, %v1108_v1  ;;  %v1375_v9 = vpack.c.bf16 %v1360_v8, %v1359_v27 }
 0xf6c   :  { %1760 = vmatprep.mubr.msk.bf16.mxu0 %vm384_vm3, %v1375_v9  ;;  %v986_v13 = vpop.permute.xlu0 %985  ;;  %v1369_v57 = vld [vmem:[#allocation3 + $0x50] sm:$0xff] }
 0xf6d   :  { %1761 = vmatmul.mubr.msk.bf16.vlgmr.msra.gmra.mxu0 %vm384_vm3, %v1376_v12  ;;  %990 = vst.msk [vmem:[#allocation3 + $0x48] sm:$0xff] %vm124_vm0, %v986_v13  ;;  %v1363_v14 = vld [vmem:[#allocation3 + $0x20] sm:$0xff] }
 0xf6e   :  { %992 = vst.msk [vmem:[#allocation3 + $0x38] sm:$0xff] %vm490_vm4, %v986_v13 }
 0xf70   :  { %v1367_v53 = vld [vmem:[#allocation3 + $0x40] sm:$0xff]  ;;  %v1370_v54 = vld [vmem:[#allocation3 + $0x58] sm:$0xff] }
 0xf71   :  { %v1364_v41 = vld [vmem:[#allocation3 + $0x28] sm:$0xff]  ;;  %v1365_v47 = vld [vmem:[#allocation3 + $0x30] sm:$0xff]  ;;  %v1380_v15 = vpack.c.bf16 %v1370_v54, %v1369_v57 }
 0xf72   :  { %v1377_v26 = vpack.c.bf16 %v1364_v41, %v1363_v14 }
 0xf74   :  { %1764 = vmatprep.mubr.msk.bf16.mxu0 %vm384_vm3, %v1377_v26  ;;  %v1368_v61 = vld [vmem:[#allocation3 + $0x48] sm:$0xff] }
 0xf75   :  { %v1366_v55 = vld [vmem:[#allocation3 + $0x38] sm:$0xff]  ;;  %v1379_v16 = vpack.c.bf16 %v1368_v61, %v1367_v53 }
 0xf76   :  { %v1378_v2 = vpack.c.bf16 %v1366_v55, %v1365_v47 }
 0xf78   :  { %1765 = vmatmul.mubr.msk.bf16.gmra.mxu0 %vm384_vm3, %v1378_v2 }
 0xf79   :  { %1768 = vmatprep.mubr.msk.bf16.mxu0 %vm384_vm3, %v1379_v16 }
 0xf80   :  { %1769 = vmatmul.mubr.msk.bf16.gmra.mxu0 %vm384_vm3, %v1380_v15 }
 0xf81   :  { %1772 = vmatprep.mubr.msk.bf16.mxu0 %vm384_vm3, %v1381_v23 }
 0xf88   :  { %1773 = vmatmul.mubr.msk.bf16.gmra.mxu0 %vm384_vm3, %v1382_v20 }
0x102d   :  { %v1762_v37 = vpop.f32.mrf.mxu0 }
0x102e   :  { %v1489_v5 = vadd.f32 %v1762_v37, %v2803_v42 }
0x102f   :  { %v1480_v40 = vpop.f32.mrf.mxu0 }
0x1030   :  { %v1481_v24 = vadd.f32 %v2803_v42, %v1480_v40  ;;  %v1545_v43 = vmax.f32 %v1489_v5, 0.0  ;;  %v1559_v40 = vld [vmem:[%s2858_s6] sm:$0x1]  ;;  %v1572_v5 = vpop.permute.xlu1 %1571 }
0x1031   :  { %v1763_v59 = vpop.f32.mrf.mxu0 }
0x1032   :  { %v1492_v35 = vadd.f32 %v1763_v59, %v2803_v42  ;;  %v1543_v25 = vmax.f32 %v1481_v24, 0.0  ;;  %v2908_v59 = vld [vmem:[#allocation5_spill] sm:$0xff] }
0x1033   :  { %v1483_v7 = vpop.f32.mrf.mxu0  ;;  %v2909_v24 = vsub.s32 0, %v2908_v59 }
0x1034   :  { %v1546_v36 = vmax.f32 %v1492_v35, 0.0  ;;  %v1484_v18 = vadd.f32 %v2803_v42, %v1483_v7 }
0x1035   :  { %v1577_v35 = vrot.slane %v1572_v5, %v2909_v24 }
0x1036   :  { %v2809_v39 = vpack.c.bf16 %v1546_v36, %v1545_v43  ;;  %v1544_v34 = vmax.f32 %v1484_v18, 0.0 }
0x1038   :  { %v2811_v49 = vpack.c.bf16 %v1544_v34, %v1543_v25  ;;  %v1766_v48 = vpop.f32.mrf.mxu0  ;;  %v1585_v37 = vsel %vm124_vm0, %v2809_v39, 0 }
0x1039   :  { %v1505_v16 = vadd.f32 %v1766_v48, %v2803_v42 }
0x103a   :  { %v1496_v51 = vpop.f32.mrf.mxu0 }
0x103b   :  { %v1549_v57 = vmax.f32 %v1505_v16, 0.0  ;;  %v1497_v23 = vadd.f32 %v2803_v42, %v1496_v51 }
0x103c   :  { %v1767_v31 = vpop.f32.mrf.mxu0 }
0x103d   :  { %v1508_v61 = vadd.f32 %v1767_v31, %v2803_v42  ;;  %v1547_v20 = vmax.f32 %v1497_v23, 0.0 }
0x103e   :  { %v1499_v32 = vpop.f32.mrf.mxu0 }
0x103f   :  { %v1550_v54 = vmax.f32 %v1508_v61, 0.0  ;;  %v1500_v21 = vadd.f32 %v2803_v42, %v1499_v32 }
0x1040   :  { %v1770_v28 = vpop.f32.mrf.mxu0 }
0x1041   :  { %v1521_v9 = vadd.f32 %v1770_v28, %v2803_v42  ;;  %v1563_v15 = vpack.c.bf16 %v1550_v54, %v1549_v57  ;;  %v1548_v45 = vmax.f32 %v1500_v21, 0.0 }
0x1042   :  { %v1512_v38 = vpop.f32.mrf.mxu0 }
0x1043   :  { %v1553_v13 = vmax.f32 %v1521_v9, 0.0  ;;  %v1513_v26 = vadd.f32 %v2803_v42, %v1512_v38  ;;  %v1591_v0 = vsel %vm124_vm0, %v1563_v15, 0  ;;  %v1562_v29 = vpack.c.bf16 %v1548_v45, %v1547_v20 }
0x1044   :  { %v1771_v17 = vpop.f32.mrf.mxu0 }
0x1045   :  { %v1524_v27 = vadd.f32 %v1771_v17, %v2803_v42  ;;  %v1551_v53 = vmax.f32 %v1513_v26, 0.0  ;;  %v1588_v44 = vsel %vm124_vm0, %v1562_v29, 0 }
0x1046   :  { %v1515_v30 = vpop.f32.mrf.mxu0 }
0x1047   :  { %v1554_v10 = vmax.f32 %v1524_v27, 0.0  ;;  %v1516_v41 = vadd.f32 %v2803_v42, %v1515_v30 }
0x1048   :  { %v1774_v19 = vpop.f32.mrf.mxu0 }
0x1049   :  { %v1537_v50 = vadd.f32 %v1774_v19, %v2803_v42  ;;  %v1565_v14 = vpack.c.bf16 %v1554_v10, %v1553_v13  ;;  %v1552_v47 = vmax.f32 %v1516_v41, 0.0 }
0x104a   :  { %v1528_v58 = vpop.f32.mrf.mxu0 }
0x104b   :  { %v1557_v4 = vmax.f32 %v1537_v50, 0.0  ;;  %v1529_v63 = vadd.f32 %v2803_v42, %v1528_v58  ;;  %v1597_v55 = vsel %vm124_vm0, %v1565_v14, 0  ;;  %v1564_v2 = vpack.c.bf16 %v1552_v47, %v1551_v53 }
0x104c   :  { %v1775_v3 = vpop.f32.mrf.mxu0 }
0x104d   :  { %v1540_v6 = vadd.f32 %v1775_v3, %v2803_v42  ;;  %v1555_v1 = vmax.f32 %v1529_v63, 0.0  ;;  %v1594_v33 = vsel %vm124_vm0, %v1564_v2, 0 }
0x104e   :  { %v1531_v22 = vpop.f32.mrf.mxu0 }
0x104f   :  { %v1558_v46 = vmax.f32 %v1540_v6, 0.0  ;;  %v1532_v62 = vadd.f32 %v2803_v42, %v1531_v22  ;;  %v1582_v42 = vsel %vm124_vm0, %v2811_v49, 0 }
0x1051   :  { %v1567_v56 = vpack.c.bf16 %v1558_v46, %v1557_v4  ;;  %v1556_v11 = vmax.f32 %v1532_v62, 0.0 }
0x1053   :  { %v1603_v52 = vsel %vm124_vm0, %v1567_v56, 0  ;;  %v1566_v8 = vpack.c.bf16 %v1556_v11, %v1555_v1 }
0x1054   :  { %1777 = vmatpush3.bf16.xpose.msra.mxu1 %v1603_v52 }
0x1055   :  { %1778 = vmatprep.subr.bf16.mxu1 %v2026_v60  ;;  %v1600_v12 = vsel %vm124_vm0, %v1566_v8, 0 }
0x105c   :  { %1779 = vmatpush3.bf16.xpose.msra.mxu1 %v1600_v12 }
0x105d   :  { %1780 = vmatprep.subr.bf16.mxu1 %v2026_v60 }
0x1064   :  { %1781 = vmatpush3.bf16.xpose.msra.mxu1 %v1597_v55 }
0x1065   :  { %1782 = vmatprep.subr.bf16.mxu1 %v2026_v60 }
0x106c   :  { %1783 = vmatpush3.bf16.xpose.msra.mxu1 %v1594_v33 }
0x106d   :  { %1784 = vmatprep.subr.bf16.mxu1 %v2026_v60 }
0x1074   :  { %1785 = vmatpush3.bf16.xpose.msra.mxu1 %v1591_v0 }
0x1075   :  { %1786 = vmatprep.subr.bf16.mxu1 %v2026_v60 }
0x107c   :  { %1787 = vmatpush3.bf16.xpose.msra.mxu1 %v1588_v44 }
0x107d   :  { %1788 = vmatprep.subr.bf16.mxu1 %v2026_v60 }
0x1084   :  { %1789 = vmatpush3.bf16.xpose.msra.mxu1 %v1585_v37 }
0x1085   :  { %1790 = vmatprep.subr.bf16.mxu1 %v2026_v60 }
0x108c   :  { %1791 = vmatpush3.bf16.xpose.msra.mxu1 %v1582_v42 }
0x1093   :  { %1793 = vmatmul.mubr.msk.bf16.vlgmr.msra.gmra.mxu1 %vm124_vm0, %v1559_v40 }
0x1153   :  { %v1639_v7 = vpop.f32.mrf.mxu1 }
0x1154   :  { %v1640_v43 = vadd.f32 %v1639_v7, %v1577_v35 }
0x1155   :  { %v1794_v36 = vpop.f32.mrf.mxu1 }
0x1156   :  { %1645 = vst [vmem:[%s2859_s8] sm:$0x1] %v1640_v43 }
0x1157   :  { %v1642_v60 = vpop.f32.mrf.mxu1 }
0x1159   :  { %v1795_v18 = vpop.f32.mrf.mxu1 }

</bundles_post_ra>
